<compile_context>
chip_gen: v7x
topology: tpu7x:2x2x1
jax: 0.10.0
libtpu: 0.0.40
codegen_flags: <defaults>
</compile_context>

<pallas_src>
import functools

import jax
import jax.numpy as jnp
from jax.experimental import pallas as pl
from jax.experimental.pallas import tpu as pltpu

TEMPERATURE = 10.0


# ----------------------------------------------------------------------------
# Pallas kernel: full greedy decode (all steps) for one sequence
# ----------------------------------------------------------------------------
def _decode_loop_kernel(
    # inputs (all resident in VMEM for the whole sequence)
    h0_ref,      # (1, H)      initial GRU hidden (layer -1)
    emb_ref,     # (S, A)      encoder embeddings (attention memory)
    T_ref,       # (V, E)      frozen word2vec embedding matrix (bf16)
    wi_ref,      # (E, 3H)     fused GRU input->gate weights  [r|z|n]   (bf16)
    wh_ref,      # (H, 3H)     fused GRU hidden->gate weights [r|z|n]   (bf16)
    bg_ref,      # (1, 4H)     fused GRU biases [b_r|b_z|b_in|b_hn]     (f32)
    wa_ref,      # (1, A+H+1)  attention params [wa_e^T | wa_h^T | b_a] (f32)
    wo_ref,      # (H+A, V)    fused output projection on [hidden;attn] (bf16)
    bo_ref,      # (1, V)      output bias                              (f32)
    # outputs
    answer_ref,  # (1, bound)  int32 greedy token ids (EOS sentinel in unused slots)
    count_ref,   # (1, 1)      int32 number of emitted (non-EOS) tokens
    attnw_ref,   # (bound, S)  attention weights per emitted token
    # scratch
    word_s,      # (1, V) f32  smooth word distribution state
    h_s,         # (1, H) f32  GRU hidden state
    count_s,     # (1,)  int32 SMEM step counter (doubles as "done" flag)
    *, sos, eos,
):
    V = word_s.shape[1]
    H = h_s.shape[1]
    S, A = emb_ref.shape
    bound = answer_ref.shape[1]

    # Loop-invariant index vectors (hoisted: JAX does not CSE broadcasts).
    lane_v = jax.lax.broadcasted_iota(jnp.int32, (1, V), 1)       # vocab lane ids
    lane_b = jax.lax.broadcasted_iota(jnp.int32, (1, bound), 1)   # answer-slot ids
    row_s = jax.lax.broadcasted_iota(jnp.int32, (bound, S), 0)    # weight-row ids

    # ---- per-sequence init --------------------------------------------------
    count_s[0] = jnp.int32(0)
    word_s[...] = jnp.where(lane_v == sos, 1.0, 0.0).astype(jnp.float32)  # one-hot SOS
    h_s[...] = h0_ref[...]
    answer_ref[...] = jnp.full((1, bound), eos, jnp.int32)   # EOS sentinel everywhere
    attnw_ref[...] = jnp.zeros_like(attnw_ref)

    # Loop-invariant attention terms: embeddings never change across steps.
    wa = wa_ref[...]                                   # (1, A+H+1)
    emb_f32 = emb_ref[...]                             # (S, A)
    emb_bf = emb_f32.astype(jnp.bfloat16)
    s_e = jax.lax.dot_general(                         # (1, S), lane-dense scores
        wa[:, :A], emb_f32, (((1,), (1,)), ((), ())),
        preferred_element_type=jnp.float32)

    @pl.loop(0, bound)
    def _(t):
        # Once EOS has been emitted, count_s stops tracking t and the whole
        # step body (every matmul) is skipped for the remaining iterations.
        @pl.when(count_s[0] == t)
        def _step():
            word = word_s[...]                          # (1, V) smooth word
            h = h_s[...]                                # (1, H)

            # embedding = self.embedding(word)  (frozen linear, no bias);
            # dropout is an eval-mode no-op.
            x = jnp.dot(word.astype(jnp.bfloat16), T_ref[...],
                        preferred_element_type=jnp.float32)            # (1, E)

            # One GRU cell step (PyTorch gate order r, z, n), 2 fused matmuls.
            gi = jnp.dot(x.astype(jnp.bfloat16), wi_ref[...],
                         preferred_element_type=jnp.float32)           # (1, 3H)
            gh = jnp.dot(h.astype(jnp.bfloat16), wh_ref[...],
                         preferred_element_type=jnp.float32)           # (1, 3H)
            bg = bg_ref[...]                                           # (1, 4H)
            r = jax.nn.sigmoid(gi[:, 0:H] + gh[:, 0:H] + bg[:, 0:H])
            z = jax.nn.sigmoid(gi[:, H:2 * H] + gh[:, H:2 * H] + bg[:, H:2 * H])
            n = jnp.tanh(gi[:, 2 * H:3 * H] + bg[:, 2 * H:3 * H]
                         + r * (gh[:, 2 * H:3 * H] + bg[:, 3 * H:4 * H]))
            h_new = (1.0 - z) * n + z * h                              # (1, H)

            # Attention: lane-dense scores, softmax, MXU weighted sum.
            s_h = jnp.sum(h_new * wa[:, A:A + H], axis=1, keepdims=True)   # (1, 1)
            scores = s_e + s_h + wa[:, A + H:A + H + 1]                    # (1, S)
            scores = scores - jnp.max(scores, axis=1, keepdims=True)
            p = jnp.exp(scores)
            w = p * pl.reciprocal(jnp.sum(p, axis=1, keepdims=True),
                                  approx=True)                             # (1, S)
            attn = jnp.dot(w.astype(jnp.bfloat16), emb_bf,
                           preferred_element_type=jnp.float32)             # (1, A)

            # Fused output projection on merge = [hidden ; attn], * temperature.
            merged = jnp.concatenate([h_new, attn], axis=1)                # (1, H+A)
            vect = (jnp.dot(merged.astype(jnp.bfloat16), wo_ref[...],
                            preferred_element_type=jnp.float32)
                    + bo_ref[...]) * TEMPERATURE                           # (1, V)

            # Greedy argmax (first max index, like torch.topk(1)), in-kernel:
            # only small int/attn outputs ever leave the chip.
            m_k = jnp.max(vect, axis=1, keepdims=True)                     # (1, 1)
            idx = jnp.min(jnp.where(vect == m_k, lane_v, jnp.int32(V)))    # scalar

            @pl.when(idx != eos)
            def _take():
                answer_ref[...] = jnp.where(lane_b == t, idx, answer_ref[...])
                attnw_ref[...] = jnp.where(row_s == t, w, attnw_ref[...])
                # next smooth word = softmax(vect); hidden feeds the next step
                ev = jnp.exp(vect - m_k)
                word_s[...] = ev * pl.reciprocal(
                    jnp.sum(ev, axis=1, keepdims=True), approx=True)
                h_s[...] = h_new
                count_s[0] = t + 1

    count_ref[...] = jnp.full((1, 1), count_s[0], jnp.int32)


def _full_spec(shape):
    nd = len(shape)
    return pl.BlockSpec(shape, lambda *args, nd=nd: (0,) * nd)


# ----------------------------------------------------------------------------
# Jitted wrapper: one pallas_call per sequence (traced once per static config)
# ----------------------------------------------------------------------------
@functools.partial(jax.jit, static_argnames=("bound", "sos_token", "eos_token"))
def _decode_sequence(h0, emb, T, w_i, w_h, b_g, w_a, w_o, b_o, *,
                     bound, sos_token, eos_token):
    V = T.shape[0]
    H = h0.shape[1]
    S = emb.shape[0]

    args = (h0, emb, T, w_i, w_h, b_g, w_a, w_o, b_o)
    out_shape = (
        jax.ShapeDtypeStruct((1, bound), jnp.int32),    # greedy token ids
        jax.ShapeDtypeStruct((1, 1), jnp.int32),        # emitted-token count
        jax.ShapeDtypeStruct((bound, S), jnp.float32),  # attention weights
    )

    # TODO(synk): for production vocab sizes on v7x (64 MiB VMEM), tile the V
    # axis of T / w_o / b_o (online softmax over V tiles, "parallel" grid axis
    # across the two TensorCores) instead of keeping them fully resident.
    return pl.pallas_call(
        functools.partial(_decode_loop_kernel, sos=sos_token, eos=eos_token),
        out_shape=out_shape,
        grid=(1,),
        in_specs=[_full_spec(a.shape) for a in args],
        out_specs=(
            _full_spec((1, bound)),
            _full_spec((1, 1)),
            _full_spec((bound, S)),
        ),
        scratch_shapes=[
            pltpu.VMEM((1, V), jnp.float32),   # smooth word state
            pltpu.VMEM((1, H), jnp.float32),   # GRU hidden state
            pltpu.SMEM((1,), jnp.int32),       # step counter / done flag
        ],
        compiler_params=pltpu.CompilerParams(
            dimension_semantics=("arbitrary",),
            vmem_limit_bytes=64 * 1024 * 1024,
        ),
    )(*args)


# ----------------------------------------------------------------------------
# Full forward, matching PyTorch SmoothAttnDecoder.forward (eval, n_layers=1)
# ----------------------------------------------------------------------------
def smooth_attn_decoder_forward(hidden, embeddings, params, *,
                                bound=25, sos_token=1, eos_token=2):
    """hidden: (n_layers, 1, H); embeddings: (1, S, A).  Returns (answer, weights)."""
    h0 = hidden[-1]                 # (1, H)   hidden[-n_layers:] with n_layers = 1
    emb = embeddings[0]             # (S, A)
    S = emb.shape[0]

    ans_buf, count_buf, w_buf = _decode_sequence(
        h0, emb,
        params["T"], params["w_i"], params["w_h"], params["b_g"],
        params["w_a"], params["w_o"], params["b_o"],
        bound=bound, sos_token=sos_token, eos_token=eos_token)

    # Single, tiny D2H transfer for the whole sequence.
    ans_np, count_np, w_np = jax.device_get((ans_buf, count_buf, w_buf))
    count = int(count_np[0, 0])
    answer = [int(v) for v in ans_np[0, :count]]
    weights = jnp.asarray(w_np[:count]).reshape(1, count, S)   # (1, T, S)
    return answer, weights


# ----------------------------------------------------------------------------
# Deterministic parameter initialization + packing (shapes follow __init__)
# ----------------------------------------------------------------------------
def init_params(key, lang_size, embedd_dim, hidden_dim, attention_dim):
    V, E, H, A = lang_size, embedd_dim, hidden_dim, attention_dim
    ks = jax.random.split(key, 16)
    s = 0.2
    rnd = lambda k, shape: jax.random.normal(k, shape, jnp.float32) * s

    # GRU pieces (gate order r, z, n), already transposed to (in, out);
    # b_r = b_ir + b_hr, b_z = b_iz + b_hz (b_in / b_hn kept separate).
    w_ir, w_iz, w_in = rnd(ks[1], (E, H)), rnd(ks[2], (E, H)), rnd(ks[3], (E, H))
    w_hr, w_hz, w_hn = rnd(ks[4], (H, H)), rnd(ks[5], (H, H)), rnd(ks[6], (H, H))
    b_r, b_z = rnd(ks[7], (1, H)), rnd(ks[8], (1, H))
    b_in, b_hn = rnd(ks[9], (1, H)), rnd(ks[10], (1, H))
    # attention Linear(A + H -> 1): [wa_e ; wa_h], bias b_a
    wa_e, wa_h, b_a = rnd(ks[11], (A, 1)), rnd(ks[12], (H, 1)), rnd(ks[13], (1, 1))
    # out Linear(A + H -> V) acting on merge = [hidden ; attn], transposed
    wo_h, wo_a = rnd(ks[14], (H, V)), rnd(ks[15], (A, V))

    return {
        # Big weights in bf16 (f32 accumulation inside the kernel).
        "T":   rnd(ks[0], (V, E)).astype(jnp.bfloat16),                       # word @ T
        "w_i": jnp.concatenate([w_ir, w_iz, w_in], 1).astype(jnp.bfloat16),   # (E, 3H)
        "w_h": jnp.concatenate([w_hr, w_hz, w_hn], 1).astype(jnp.bfloat16),   # (H, 3H)
        "w_o": jnp.concatenate([wo_h, wo_a], 0).astype(jnp.bfloat16),         # (H+A, V)
        # Small params stay f32.
        "b_g": jnp.concatenate([b_r, b_z, b_in, b_hn], 1),                    # (1, 4H)
        "w_a": jnp.concatenate([wa_e.T, wa_h.T, b_a], 1),                     # (1, A+H+1)
        "b_o": jnp.zeros((1, V), jnp.float32),
    }


if __name__ == "__main__":
    key = jax.random.PRNGKey(0)

    # Small demo shapes, chosen lane-aligned (multiples of 128 on feature dims,
    # matching MXU/vreg tiling) so all in-kernel slices/concats are aligned.
    lang_size = 256      # V
    embedd_dim = 128     # E
    hidden_dim = 128     # H
    attention_dim = 128  # A
    seq_len = 8          # S
    bound = 6
    SOS, EOS = 1, 2

    kp, kh, ke = jax.random.split(key, 3)
    params = init_params(kp, lang_size, embedd_dim, hidden_dim, attention_dim)

    hidden0 = jax.random.normal(kh, (1, 1, hidden_dim), jnp.float32) * 0.5
    embeddings = jax.random.normal(ke, (1, seq_len, attention_dim), jnp.float32) * 0.5

    answer, weights = smooth_attn_decoder_forward(
        hidden0, embeddings, params, bound=bound, sos_token=SOS, eos_token=EOS)

    jax.block_until_ready(weights)
    # TODO(synk): n_layers > 1 GRU stacking and training-mode dropout are not
    # implemented (forward here matches eval mode with the default n_layers=1).
    # TODO(synk): batching multiple independent decode streams (M >= 8 rows)
    # would be needed to actually fill the MXU for this per-token workload.
    print("KERNEL_OK")
</pallas_src>

<mosaic_0001>
module attributes {stable_mosaic.version = 11 : i64} {
  func.func @_decode_loop_kernel(%arg0: i32, %arg1: memref<1x128xf32, #tpu.memory_space<vmem>>, %arg2: memref<8x128xf32, #tpu.memory_space<vmem>>, %arg3: memref<256x128xbf16, #tpu.memory_space<vmem>>, %arg4: memref<128x384xbf16, #tpu.memory_space<vmem>>, %arg5: memref<128x384xbf16, #tpu.memory_space<vmem>>, %arg6: memref<1x512xf32, #tpu.memory_space<vmem>>, %arg7: memref<1x257xf32, #tpu.memory_space<vmem>>, %arg8: memref<256x256xbf16, #tpu.memory_space<vmem>>, %arg9: memref<1x256xf32, #tpu.memory_space<vmem>>, %arg10: memref<1x6xi32, #tpu.memory_space<vmem>>, %arg11: memref<1x1xi32, #tpu.memory_space<vmem>>, %arg12: memref<6x8xf32, #tpu.memory_space<vmem>>, %arg13: memref<1x256xf32, #tpu.memory_space<vmem>>, %arg14: memref<1x128xf32, #tpu.memory_space<vmem>>, %arg15: memref<1xi32, #tpu.memory_space<smem>>) attributes {dimension_semantics = [#tpu.dimension_semantics<arbitrary>], iteration_bounds = array<i64: 1>, scalar_prefetch = 0 : i64, scratch_operands = 3 : i64, tpu.core_type = #tpu.core_type<tc>, window_params = [{pipeline_mode = #tpu.pipeline_mode<synchronous>, transform_indices = @transform_0, window_bounds = array<i64: 1, 128>}, {pipeline_mode = #tpu.pipeline_mode<synchronous>, transform_indices = @transform_1, window_bounds = array<i64: 8, 128>}, {pipeline_mode = #tpu.pipeline_mode<synchronous>, transform_indices = @transform_2, window_bounds = array<i64: 256, 128>}, {pipeline_mode = #tpu.pipeline_mode<synchronous>, transform_indices = @transform_3, window_bounds = array<i64: 128, 384>}, {pipeline_mode = #tpu.pipeline_mode<synchronous>, transform_indices = @transform_4, window_bounds = array<i64: 128, 384>}, {pipeline_mode = #tpu.pipeline_mode<synchronous>, transform_indices = @transform_5, window_bounds = array<i64: 1, 512>}, {pipeline_mode = #tpu.pipeline_mode<synchronous>, transform_indices = @transform_6, window_bounds = array<i64: 1, 257>}, {pipeline_mode = #tpu.pipeline_mode<synchronous>, transform_indices = @transform_7, window_bounds = array<i64: 256, 256>}, {pipeline_mode = #tpu.pipeline_mode<synchronous>, transform_indices = @transform_8, window_bounds = array<i64: 1, 256>}, {pipeline_mode = #tpu.pipeline_mode<synchronous>, transform_indices = @transform_9, window_bounds = array<i64: 1, 6>}, {pipeline_mode = #tpu.pipeline_mode<synchronous>, transform_indices = @transform_10, window_bounds = array<i64: 1, 1>}, {pipeline_mode = #tpu.pipeline_mode<synchronous>, transform_indices = @transform_11, window_bounds = array<i64: 6, 8>}]} {
    %0 = tpu.iota {dimensions = array<i32: 1>} : vector<1x256xi32>
    %1 = tpu.iota {dimensions = array<i32: 1>} : vector<1x6xi32>
    %2 = tpu.iota {dimensions = array<i32: 0>} : vector<6x8xi32>
    %c0_i32 = arith.constant 0 : i32
    %c0 = arith.constant 0 : index
    %3 = memref.load %arg15[%c0] : memref<1xi32, #tpu.memory_space<smem>>
    memref.store %c0_i32, %arg15[%c0] : memref<1xi32, #tpu.memory_space<smem>>
    %c1_i32 = arith.constant 1 : i32
    %4 = vector.broadcast %c1_i32 : i32 to vector<1x256xi32>
    %5 = arith.cmpi eq, %0, %4 : vector<1x256xi32>
    %cst = arith.constant 1.000000e+00 : f32
    %cst_0 = arith.constant 0.000000e+00 : f32
    %6 = vector.broadcast %cst : f32 to vector<1x256xf32>
    %7 = vector.broadcast %cst_0 : f32 to vector<1x256xf32>
    %8 = arith.select %5, %6, %7 : vector<1x256xi1>, vector<1x256xf32>
    %c0_1 = arith.constant 0 : index
    %c0_2 = arith.constant 0 : index
    %9 = vector.load %arg13[%c0_1, %c0_2] : memref<1x256xf32, #tpu.memory_space<vmem>>, vector<1x256xf32>
    tpu.vector_store %arg13[%c0_1, %c0_2], %8 {strides = array<i32>} : memref<1x256xf32, #tpu.memory_space<vmem>>, vector<1x256xf32>,
    %c0_3 = arith.constant 0 : index
    %c0_4 = arith.constant 0 : index
    %10 = vector.load %arg1[%c0_3, %c0_4] : memref<1x128xf32, #tpu.memory_space<vmem>>, vector<1x128xf32>
    %c0_5 = arith.constant 0 : index
    %c0_6 = arith.constant 0 : index
    %11 = vector.load %arg14[%c0_5, %c0_6] : memref<1x128xf32, #tpu.memory_space<vmem>>, vector<1x128xf32>
    tpu.vector_store %arg14[%c0_5, %c0_6], %10 {strides = array<i32>} : memref<1x128xf32, #tpu.memory_space<vmem>>, vector<1x128xf32>,
    %c2_i32 = arith.constant 2 : i32
    %12 = vector.broadcast %c2_i32 : i32 to vector<1x6xi32>
    %c0_7 = arith.constant 0 : index
    %c0_8 = arith.constant 0 : index
    %13 = vector.load %arg10[%c0_7, %c0_8] : memref<1x6xi32, #tpu.memory_space<vmem>>, vector<1x6xi32>
    tpu.vector_store %arg10[%c0_7, %c0_8], %12 {strides = array<i32>} : memref<1x6xi32, #tpu.memory_space<vmem>>, vector<1x6xi32>,
    %cst_9 = arith.constant 0.000000e+00 : f32
    %14 = vector.broadcast %cst_9 : f32 to vector<6x8xf32>
    %c0_10 = arith.constant 0 : index
    %c0_11 = arith.constant 0 : index
    %15 = vector.load %arg12[%c0_10, %c0_11] : memref<6x8xf32, #tpu.memory_space<vmem>>, vector<6x8xf32>
    tpu.vector_store %arg12[%c0_10, %c0_11], %14 {strides = array<i32>} : memref<6x8xf32, #tpu.memory_space<vmem>>, vector<6x8xf32>,
    %c0_12 = arith.constant 0 : index
    %c0_13 = arith.constant 0 : index
    %16 = vector.load %arg7[%c0_12, %c0_13] : memref<1x257xf32, #tpu.memory_space<vmem>>, vector<1x257xf32>
    %c0_14 = arith.constant 0 : index
    %c0_15 = arith.constant 0 : index
    %17 = vector.load %arg2[%c0_14, %c0_15] : memref<8x128xf32, #tpu.memory_space<vmem>>, vector<8x128xf32>
    %18 = arith.truncf %17 : vector<8x128xf32> to vector<8x128xbf16>
    %19 = vector.extract_strided_slice %16 {offsets = [0, 0], sizes = [1, 128], strides = [1, 1]} : vector<1x257xf32> to vector<1x128xf32>
    %cst_16 = arith.constant dense<0.000000e+00> : vector<1x8xf32>
    %20 = tpu.matmul %19, %17, %cst_16 {dimension_numbers = #tpu.dot_dimension_numbers<[1], [1], [0], [0], [0, 0, 1, 0], [], []>} : vector<1x128xf32>, vector<8x128xf32>, vector<1x8xf32> -> vector<1x8xf32>
    %c0_i32_17 = arith.constant 0 : i32
    %c6_i32 = arith.constant 6 : i32
    %21 = arith.addi %c0_i32_17, %c6_i32 : i32
    %c1_i32_18 = arith.constant 1 : i32
    scf.for %arg16 = %c0_i32_17 to %21 step %c1_i32_18  : i32 {
      %c1_i32_23 = arith.constant 1 : i32
      %25 = arith.muli %arg16, %c1_i32_23 : i32
      %c0_i32_24 = arith.constant 0 : i32
      %26 = arith.addi %c0_i32_24, %25 : i32
      %c0_25 = arith.constant 0 : index
      %27 = memref.load %arg15[%c0_25] : memref<1xi32, #tpu.memory_space<smem>>
      %28 = arith.cmpi eq, %27, %26 : i32
      %29 = arith.extui %28 : i1 to i32
      %c0_i32_26 = arith.constant 0 : i32
      %30 = arith.cmpi ne, %29, %c0_i32_26 : i32
      scf.if %30 {
        %c0_27 = arith.constant 0 : index
        %c0_28 = arith.constant 0 : index
        %31 = vector.load %arg13[%c0_27, %c0_28] : memref<1x256xf32, #tpu.memory_space<vmem>>, vector<1x256xf32>
        %c0_29 = arith.constant 0 : index
        %c0_30 = arith.constant 0 : index
        %32 = vector.load %arg14[%c0_29, %c0_30] : memref<1x128xf32, #tpu.memory_space<vmem>>, vector<1x128xf32>
        %33 = arith.truncf %31 : vector<1x256xf32> to vector<1x256xbf16>
        %c0_31 = arith.constant 0 : index
        %c0_32 = arith.constant 0 : index
        %34 = vector.load %arg3[%c0_31, %c0_32] : memref<256x128xbf16, #tpu.memory_space<vmem>>, vector<256x128xbf16>
        %cst_33 = arith.constant dense<0.000000e+00> : vector<1x128xf32>
        %35 = tpu.matmul %33, %34, %cst_33 {dimension_numbers = #tpu.dot_dimension_numbers<[1], [0], [0], [1], [0, 0, 1, 1], [], []>} : vector<1x256xbf16>, vector<256x128xbf16>, vector<1x128xf32> -> vector<1x128xf32>
        %36 = arith.truncf %35 : vector<1x128xf32> to vector<1x128xbf16>
        %c0_34 = arith.constant 0 : index
        %c0_35 = arith.constant 0 : index
        %37 = vector.load %arg4[%c0_34, %c0_35] : memref<128x384xbf16, #tpu.memory_space<vmem>>, vector<128x384xbf16>
        %cst_36 = arith.constant dense<0.000000e+00> : vector<1x384xf32>
        %38 = tpu.matmul %36, %37, %cst_36 {dimension_numbers = #tpu.dot_dimension_numbers<[1], [0], [0], [1], [0, 0, 1, 1], [], []>} : vector<1x128xbf16>, vector<128x384xbf16>, vector<1x384xf32> -> vector<1x384xf32>
        %39 = arith.truncf %32 : vector<1x128xf32> to vector<1x128xbf16>
        %c0_37 = arith.constant 0 : index
        %c0_38 = arith.constant 0 : index
        %40 = vector.load %arg5[%c0_37, %c0_38] : memref<128x384xbf16, #tpu.memory_space<vmem>>, vector<128x384xbf16>
        %cst_39 = arith.constant dense<0.000000e+00> : vector<1x384xf32>
        %41 = tpu.matmul %39, %40, %cst_39 {dimension_numbers = #tpu.dot_dimension_numbers<[1], [0], [0], [1], [0, 0, 1, 1], [], []>} : vector<1x128xbf16>, vector<128x384xbf16>, vector<1x384xf32> -> vector<1x384xf32>
        %c0_40 = arith.constant 0 : index
        %c0_41 = arith.constant 0 : index
        %42 = vector.load %arg6[%c0_40, %c0_41] : memref<1x512xf32, #tpu.memory_space<vmem>>, vector<1x512xf32>
        %43 = vector.extract_strided_slice %38 {offsets = [0, 0], sizes = [1, 128], strides = [1, 1]} : vector<1x384xf32> to vector<1x128xf32>
        %44 = vector.extract_strided_slice %41 {offsets = [0, 0], sizes = [1, 128], strides = [1, 1]} : vector<1x384xf32> to vector<1x128xf32>
        %45 = arith.addf %43, %44 : vector<1x128xf32>
        %46 = vector.extract_strided_slice %42 {offsets = [0, 0], sizes = [1, 128], strides = [1, 1]} : vector<1x512xf32> to vector<1x128xf32>
        %47 = arith.addf %45, %46 : vector<1x128xf32>
        %48 = arith.negf %47 : vector<1x128xf32>
        %49 = math.exp %48 : vector<1x128xf32>
        %cst_42 = arith.constant 1.000000e+00 : f32
        %50 = vector.broadcast %cst_42 : f32 to vector<1x128xf32>
        %51 = arith.addf %50, %49 : vector<1x128xf32>
        %52 = arith.divf %50, %51 : vector<1x128xf32>
        %53 = vector.extract_strided_slice %38 {offsets = [0, 128], sizes = [1, 128], strides = [1, 1]} : vector<1x384xf32> to vector<1x128xf32>
        %54 = vector.extract_strided_slice %41 {offsets = [0, 128], sizes = [1, 128], strides = [1, 1]} : vector<1x384xf32> to vector<1x128xf32>
        %55 = arith.addf %53, %54 : vector<1x128xf32>
        %56 = vector.extract_strided_slice %42 {offsets = [0, 128], sizes = [1, 128], strides = [1, 1]} : vector<1x512xf32> to vector<1x128xf32>
        %57 = arith.addf %55, %56 : vector<1x128xf32>
        %58 = arith.negf %57 : vector<1x128xf32>
        %59 = math.exp %58 : vector<1x128xf32>
        %cst_43 = arith.constant 1.000000e+00 : f32
        %60 = vector.broadcast %cst_43 : f32 to vector<1x128xf32>
        %61 = arith.addf %60, %59 : vector<1x128xf32>
        %62 = arith.divf %60, %61 : vector<1x128xf32>
        %63 = vector.extract_strided_slice %38 {offsets = [0, 256], sizes = [1, 128], strides = [1, 1]} : vector<1x384xf32> to vector<1x128xf32>
        %64 = vector.extract_strided_slice %42 {offsets = [0, 256], sizes = [1, 128], strides = [1, 1]} : vector<1x512xf32> to vector<1x128xf32>
        %65 = arith.addf %63, %64 : vector<1x128xf32>
        %66 = vector.extract_strided_slice %41 {offsets = [0, 256], sizes = [1, 128], strides = [1, 1]} : vector<1x384xf32> to vector<1x128xf32>
        %67 = vector.extract_strided_slice %42 {offsets = [0, 384], sizes = [1, 128], strides = [1, 1]} : vector<1x512xf32> to vector<1x128xf32>
        %68 = arith.addf %66, %67 : vector<1x128xf32>
        %69 = arith.mulf %52, %68 : vector<1x128xf32>
        %70 = arith.addf %65, %69 : vector<1x128xf32>
        %71 = math.tanh %70 : vector<1x128xf32>
        %cst_44 = arith.constant 1.000000e+00 : f32
        %72 = vector.broadcast %cst_44 : f32 to vector<1x128xf32>
        %73 = arith.subf %72, %62 : vector<1x128xf32>
        %74 = arith.mulf %73, %71 : vector<1x128xf32>
        %75 = arith.mulf %62, %32 : vector<1x128xf32>
        %76 = arith.addf %74, %75 : vector<1x128xf32>
        %77 = vector.extract_strided_slice %16 {offsets = [0, 128], sizes = [1, 128], strides = [1, 1]} : vector<1x257xf32> to vector<1x128xf32>
        %78 = arith.mulf %76, %77 : vector<1x128xf32>
        %cst_45 = arith.constant dense<0.000000e+00> : vector<1xf32>
        %79 = vector.multi_reduction <add>, %78, %cst_45 [1] : vector<1x128xf32> to vector<1xf32>
        %80 = vector.shape_cast %79 : vector<1xf32> to vector<1x1xf32>
        %81 = vector.broadcast %80 : vector<1x1xf32> to vector<1x8xf32>
        %82 = arith.addf %20, %81 : vector<1x8xf32>
        %83 = vector.extract_strided_slice %16 {offsets = [0, 256], sizes = [1, 1], strides = [1, 1]} : vector<1x257xf32> to vector<1x1xf32>
        %84 = vector.broadcast %83 : vector<1x1xf32> to vector<1x8xf32>
        %85 = arith.addf %82, %84 : vector<1x8xf32>
        %cst_46 = arith.constant dense<0xFF800000> : vector<1xf32>
        %86 = vector.multi_reduction <maximumf>, %85, %cst_46 [1] : vector<1x8xf32> to vector<1xf32>
        %87 = vector.shape_cast %86 : vector<1xf32> to vector<1x1xf32>
        %88 = vector.broadcast %87 : vector<1x1xf32> to vector<1x8xf32>
        %89 = arith.subf %85, %88 : vector<1x8xf32>
        %90 = math.exp %89 : vector<1x8xf32>
        %cst_47 = arith.constant dense<0.000000e+00> : vector<1xf32>
        %91 = vector.multi_reduction <add>, %90, %cst_47 [1] : vector<1x8xf32> to vector<1xf32>
        %92 = vector.shape_cast %91 : vector<1xf32> to vector<1x1xf32>
        %93 = tpu.reciprocal %92 {approx = true} : vector<1x1xf32> -> vector<1x1xf32>
        %94 = vector.broadcast %93 : vector<1x1xf32> to vector<1x8xf32>
        %95 = arith.mulf %90, %94 : vector<1x8xf32>
        %96 = arith.truncf %95 : vector<1x8xf32> to vector<1x8xbf16>
        %cst_48 = arith.constant dense<0.000000e+00> : vector<1x128xf32>
        %97 = tpu.matmul %96, %18, %cst_48 {dimension_numbers = #tpu.dot_dimension_numbers<[1], [0], [0], [1], [0, 0, 1, 1], [], []>} : vector<1x8xbf16>, vector<8x128xbf16>, vector<1x128xf32> -> vector<1x128xf32>
        %98 = tpu.concatenate %76, %97 in 1 : vector<1x128xf32>, vector<1x128xf32> -> vector<1x256xf32>
        %99 = arith.truncf %98 : vector<1x256xf32> to vector<1x256xbf16>
        %c0_49 = arith.constant 0 : index
        %c0_50 = arith.constant 0 : index
        %100 = vector.load %arg8[%c0_49, %c0_50] : memref<256x256xbf16, #tpu.memory_space<vmem>>, vector<256x256xbf16>
        %cst_51 = arith.constant dense<0.000000e+00> : vector<1x256xf32>
        %101 = tpu.matmul %99, %100, %cst_51 {dimension_numbers = #tpu.dot_dimension_numbers<[1], [0], [0], [1], [0, 0, 1, 1], [], []>} : vector<1x256xbf16>, vector<256x256xbf16>, vector<1x256xf32> -> vector<1x256xf32>
        %c0_52 = arith.constant 0 : index
        %c0_53 = arith.constant 0 : index
        %102 = vector.load %arg9[%c0_52, %c0_53] : memref<1x256xf32, #tpu.memory_space<vmem>>, vector<1x256xf32>
        %103 = arith.addf %101, %102 : vector<1x256xf32>
        %cst_54 = arith.constant 1.000000e+01 : f32
        %104 = vector.broadcast %cst_54 : f32 to vector<1x256xf32>
        %105 = arith.mulf %103, %104 : vector<1x256xf32>
        %cst_55 = arith.constant dense<0xFF800000> : vector<1xf32>
        %106 = vector.multi_reduction <maximumf>, %105, %cst_55 [1] : vector<1x256xf32> to vector<1xf32>
        %107 = vector.shape_cast %106 : vector<1xf32> to vector<1x1xf32>
        %108 = vector.broadcast %107 : vector<1x1xf32> to vector<1x256xf32>
        %109 = arith.cmpf oeq, %105, %108 : vector<1x256xf32>
        %c256_i32 = arith.constant 256 : i32
        %110 = vector.broadcast %c256_i32 : i32 to vector<1x256xi32>
        %111 = arith.select %109, %0, %110 : vector<1x256xi1>, vector<1x256xi32>
        %112 = vector.shape_cast %111 : vector<1x256xi32> to vector<1x1x256xi32>
        %cst_56 = arith.constant dense<2147483647> : vector<1xi32>
        %113 = vector.multi_reduction <minsi>, %112, %cst_56 [1, 2] : vector<1x1x256xi32> to vector<1xi32>
        %114 = vector.shape_cast %113 : vector<1xi32> to vector<1x1x1xi32>
        %115 = vector.extract %114[0, 0, 0] : i32 from vector<1x1x1xi32>
        %c2_i32_57 = arith.constant 2 : i32
        %116 = arith.cmpi ne, %115, %c2_i32_57 : i32
        %117 = arith.extui %116 : i1 to i32
        %c0_i32_58 = arith.constant 0 : i32
        %118 = arith.cmpi ne, %117, %c0_i32_58 : i32
        scf.if %118 {
          %119 = vector.broadcast %26 : i32 to vector<1x6xi32>
          %120 = arith.cmpi eq, %1, %119 : vector<1x6xi32>
          %c0_59 = arith.constant 0 : index
          %c0_60 = arith.constant 0 : index
          %121 = vector.load %arg10[%c0_59, %c0_60] : memref<1x6xi32, #tpu.memory_space<vmem>>, vector<1x6xi32>
          %122 = vector.broadcast %115 : i32 to vector<1x6xi32>
          %123 = arith.select %120, %122, %121 : vector<1x6xi1>, vector<1x6xi32>
          %c0_61 = arith.constant 0 : index
          %c0_62 = arith.constant 0 : index
          %124 = vector.load %arg10[%c0_61, %c0_62] : memref<1x6xi32, #tpu.memory_space<vmem>>, vector<1x6xi32>
          tpu.vector_store %arg10[%c0_61, %c0_62], %123 {strides = array<i32>} : memref<1x6xi32, #tpu.memory_space<vmem>>, vector<1x6xi32>,
          %125 = vector.broadcast %26 : i32 to vector<6x8xi32>
          %126 = arith.cmpi eq, %2, %125 : vector<6x8xi32>
          %c0_63 = arith.constant 0 : index
          %c0_64 = arith.constant 0 : index
          %127 = vector.load %arg12[%c0_63, %c0_64] : memref<6x8xf32, #tpu.memory_space<vmem>>, vector<6x8xf32>
          %128 = vector.shape_cast %95 : vector<1x8xf32> to vector<1x8xf32>
          %129 = vector.broadcast %128 : vector<1x8xf32> to vector<6x8xf32>
          %130 = arith.select %126, %129, %127 : vector<6x8xi1>, vector<6x8xf32>
          %c0_65 = arith.constant 0 : index
          %c0_66 = arith.constant 0 : index
          %131 = vector.load %arg12[%c0_65, %c0_66] : memref<6x8xf32, #tpu.memory_space<vmem>>, vector<6x8xf32>
          tpu.vector_store %arg12[%c0_65, %c0_66], %130 {strides = array<i32>} : memref<6x8xf32, #tpu.memory_space<vmem>>, vector<6x8xf32>,
          %132 = vector.broadcast %107 : vector<1x1xf32> to vector<1x256xf32>
          %133 = arith.subf %105, %132 : vector<1x256xf32>
          %134 = math.exp %133 : vector<1x256xf32>
          %cst_67 = arith.constant dense<0.000000e+00> : vector<1xf32>
          %135 = vector.multi_reduction <add>, %134, %cst_67 [1] : vector<1x256xf32> to vector<1xf32>
          %136 = vector.shape_cast %135 : vector<1xf32> to vector<1x1xf32>
          %137 = tpu.reciprocal %136 {approx = true} : vector<1x1xf32> -> vector<1x1xf32>
          %138 = vector.broadcast %137 : vector<1x1xf32> to vector<1x256xf32>
          %139 = arith.mulf %134, %138 : vector<1x256xf32>
          %c0_68 = arith.constant 0 : index
          %c0_69 = arith.constant 0 : index
          %140 = vector.load %arg13[%c0_68, %c0_69] : memref<1x256xf32, #tpu.memory_space<vmem>>, vector<1x256xf32>
          tpu.vector_store %arg13[%c0_68, %c0_69], %139 {strides = array<i32>} : memref<1x256xf32, #tpu.memory_space<vmem>>, vector<1x256xf32>,
          %c0_70 = arith.constant 0 : index
          %c0_71 = arith.constant 0 : index
          %141 = vector.load %arg14[%c0_70, %c0_71] : memref<1x128xf32, #tpu.memory_space<vmem>>, vector<1x128xf32>
          tpu.vector_store %arg14[%c0_70, %c0_71], %76 {strides = array<i32>} : memref<1x128xf32, #tpu.memory_space<vmem>>, vector<1x128xf32>,
          %c1_i32_72 = arith.constant 1 : i32
          %142 = arith.addi %26, %c1_i32_72 : i32
          %c0_73 = arith.constant 0 : index
          %143 = memref.load %arg15[%c0_73] : memref<1xi32, #tpu.memory_space<smem>>
          memref.store %142, %arg15[%c0_73] : memref<1xi32, #tpu.memory_space<smem>>
        } else {
        }
      } else {
      }
    }
    %c6_i32_19 = arith.constant 6 : i32
    %c0_20 = arith.constant 0 : index
    %22 = memref.load %arg15[%c0_20] : memref<1xi32, #tpu.memory_space<smem>>
    %23 = vector.broadcast %22 : i32 to vector<1x1xi32>
    %c0_21 = arith.constant 0 : index
    %c0_22 = arith.constant 0 : index
    %24 = vector.load %arg11[%c0_21, %c0_22] : memref<1x1xi32, #tpu.memory_space<vmem>>, vector<1x1xi32>
    tpu.vector_store %arg11[%c0_21, %c0_22], %23 {strides = array<i32>} : memref<1x1xi32, #tpu.memory_space<vmem>>, vector<1x1xi32>,
    return
  }
  func.func @transform_0(%arg0: i32) -> (i32, i32) {
    %c0_i32 = arith.constant 0 : i32
    %c0_i32_0 = arith.constant 0 : i32
    %c0_i32_1 = arith.constant 0 : i32
    return %c0_i32, %c0_i32_0 : i32, i32
  }
  func.func @transform_1(%arg0: i32) -> (i32, i32) {
    %c0_i32 = arith.constant 0 : i32
    %c0_i32_0 = arith.constant 0 : i32
    %c0_i32_1 = arith.constant 0 : i32
    return %c0_i32, %c0_i32_0 : i32, i32
  }
  func.func @transform_2(%arg0: i32) -> (i32, i32) {
    %c0_i32 = arith.constant 0 : i32
    %c0_i32_0 = arith.constant 0 : i32
    %c0_i32_1 = arith.constant 0 : i32
    return %c0_i32, %c0_i32_0 : i32, i32
  }
  func.func @transform_3(%arg0: i32) -> (i32, i32) {
    %c0_i32 = arith.constant 0 : i32
    %c0_i32_0 = arith.constant 0 : i32
    %c0_i32_1 = arith.constant 0 : i32
    return %c0_i32, %c0_i32_0 : i32, i32
  }
  func.func @transform_4(%arg0: i32) -> (i32, i32) {
    %c0_i32 = arith.constant 0 : i32
    %c0_i32_0 = arith.constant 0 : i32
    %c0_i32_1 = arith.constant 0 : i32
    return %c0_i32, %c0_i32_0 : i32, i32
  }
  func.func @transform_5(%arg0: i32) -> (i32, i32) {
    %c0_i32 = arith.constant 0 : i32
    %c0_i32_0 = arith.constant 0 : i32
    %c0_i32_1 = arith.constant 0 : i32
    return %c0_i32, %c0_i32_0 : i32, i32
  }
  func.func @transform_6(%arg0: i32) -> (i32, i32) {
    %c0_i32 = arith.constant 0 : i32
    %c0_i32_0 = arith.constant 0 : i32
    %c0_i32_1 = arith.constant 0 : i32
    return %c0_i32, %c0_i32_0 : i32, i32
  }
  func.func @transform_7(%arg0: i32) -> (i32, i32) {
    %c0_i32 = arith.constant 0 : i32
    %c0_i32_0 = arith.constant 0 : i32
    %c0_i32_1 = arith.constant 0 : i32
    return %c0_i32, %c0_i32_0 : i32, i32
  }
  func.func @transform_8(%arg0: i32) -> (i32, i32) {
    %c0_i32 = arith.constant 0 : i32
    %c0_i32_0 = arith.constant 0 : i32
    %c0_i32_1 = arith.constant 0 : i32
    return %c0_i32, %c0_i32_0 : i32, i32
  }
  func.func @transform_9(%arg0: i32) -> (i32, i32) {
    %c0_i32 = arith.constant 0 : i32
    %c0_i32_0 = arith.constant 0 : i32
    %c0_i32_1 = arith.constant 0 : i32
    return %c0_i32, %c0_i32_0 : i32, i32
  }
  func.func @transform_10(%arg0: i32) -> (i32, i32) {
    %c0_i32 = arith.constant 0 : i32
    %c0_i32_0 = arith.constant 0 : i32
    %c0_i32_1 = arith.constant 0 : i32
    return %c0_i32, %c0_i32_0 : i32, i32
  }
  func.func @transform_11(%arg0: i32) -> (i32, i32) {
    %c0_i32 = arith.constant 0 : i32
    %c0_i32_0 = arith.constant 0 : i32
    %c0_i32_1 = arith.constant 0 : i32
    return %c0_i32, %c0_i32_0 : i32, i32
  }
}

</mosaic_0001>

<bundles_post_ra>
// kernel: _decode_sequence.1
= control target key start
LH: loop header
LB: loop body
LE: loop exit
PB: predicated region body
PF: predicated region fallthrough
CT: control target
= control target key end

     0   :  { %17 = vsyncpa [#allocation6], 0  ;;  %s2505_s0 = inlined_call_operand.hbm [shape: f32[1,128], index: 0, kind: input, shape index: {}]   ;;  %s2506_s1 = inlined_call_operand.hbm [shape: f32[8,128], index: 1, kind: input, shape index: {}]   ;;  %s2507_s2 = inlined_call_operand.hbm [shape: bf16[256,128], index: 2, kind: input, shape index: {}]   ;;  %s2508_s3 = inlined_call_operand.hbm [shape: bf16[128,384], index: 3, kind: input, shape index: {}]   ;;  %s2509_s4 = inlined_call_operand.hbm [shape: bf16[128,384], index: 4, kind: input, shape index: {}]   ;;  %s2510_s5 = inlined_call_operand.hbm [shape: f32[1,512], index: 5, kind: input, shape index: {}]   ;;  %s2511_s6 = inlined_call_operand.hbm [shape: f32[1,257], index: 6, kind: input, shape index: {}]   ;;  %s2512_s7 = inlined_call_operand.hbm [shape: bf16[256,256], index: 7, kind: input, shape index: {}]   ;;  %s2513_s8 = inlined_call_operand.hbm [shape: f32[1,256], index: 8, kind: input, shape index: {}]   ;;  %s2514_s9 = inlined_call_operand.hbm [shape: s32[1,6], index: 9, kind: output, shape index: {0}]   ;;  %s2515_s10 = inlined_call_operand.hbm [shape: s32[1,1], index: 10, kind: output, shape index: {1}]   ;;  %s2516_s11 = inlined_call_operand.hbm [shape: f32[6,8], index: 11, kind: output, shape index: {2}]  }
   0x1   :  { %18 = vsyncpa [#allocation9], 0 }
   0x2   :  { %19 = vsyncpa [#allocation12], 0 }
   0x3   :  { %20 = vsyncpa [#allocation15], 0 }
   0x4   :  { %21 = vsyncpa [#allocation18], 0 }
   0x5   :  { %22 = vsyncpa [#allocation7], 0 }
   0x6   :  { %23 = vsyncpa [#allocation22], 0  ;;  %s2125_s17 = smov [#allocation8]   ;;  %s2126_s19 = smov [#allocation11]  }
   0x7   :  { %s40_s18 = sshll.u32 %s2125_s17, 4  ;;  %s61_s20 = sshll.u32 %s2126_s19, 4  ;;  %s41_s18 = int_to_ptr.vmem [resolvable:$true] %s40_s18  ;;  %s2210_s20 = int_to_ptr.vmem [resolvable:$true] %s61_s20 }
   0x8   :  { %s1839_s23 = scalar_lea.hbm %s2506_s1, 128 }
   0x9   :  { %p1840_p0 = scmp.ne.s32.totalorder %s2506_s1, %s1839_s23  ;;  %p1843_p1 = scmp.lt.u32.totalorder %s1839_s23, %s2506_s1 }
   0xb   :  { %p1845_p2 = pnand %p1843_p1, %p1840_p0 }
   0xd   :  { %1848 = shalt.err (!%p1845_p2)
}
   0xe   :  { %s1849_s28 = scalar_lea.vmem %s41_s18, 128  ;;  %p1854_p4 = scmp.lt.s32.totalorder %s41_s18, %s41_s18 }
   0xf   :  { %p1850_p3 = scmp.ne.s32.totalorder %s41_s18, %s1849_s28  ;;  %p1855_p5 = scmp.lt.s32.totalorder %s1849_s28, %s1849_s28 }
  0x11   :  { %p1856_p6 = por %p1855_p5, %p1854_p4 }
  0x13   :  { %p1857_p7 = pnand %p1856_p6, %p1850_p3 }
  0x15   :  { %1860 = shalt.err (!%p1857_p7)
}
  0x16   :  { %43 = dma.hbm_to_vmem [thread:$0]  %s2506_s1, 128, %s41_s18, [#allocation9]  }
  0x17   :  { %s1861_s14 = scalar_lea.hbm %s2508_s3, 3072 }
  0x18   :  { %p1862_p8 = scmp.ne.s32.totalorder %s2508_s3, %s1861_s14  ;;  %p1865_p9 = scmp.lt.u32.totalorder %s1861_s14, %s2508_s3 }
  0x1a   :  { %p1867_p10 = pnand %p1865_p9, %p1862_p8 }
  0x1c   :  { %1870 = shalt.err (!%p1867_p10)
}
  0x1d   :  { %s1871_s21 = scalar_lea.vmem %s2210_s20, 3072  ;;  %p1876_p12 = scmp.lt.s32.totalorder %s2210_s20, %s2210_s20 }
  0x1e   :  { %p1872_p11 = scmp.ne.s32.totalorder %s2210_s20, %s1871_s21  ;;  %p1877_p13 = scmp.lt.s32.totalorder %s1871_s21, %s1871_s21 }
  0x20   :  { %p1878_p0 = por %p1877_p13, %p1876_p12 }
  0x22   :  { %p1879_p1 = pnand %p1878_p0, %p1872_p11 }
  0x24   :  { %1882 = shalt.err (!%p1879_p1)
}
  0x25   :  { %s2127_s1 = smov 192   ;;  %s2128_s18 = smov 12  }
  0x26   :  { %67 = dma.hbm_to_vmem [thread:$0]  %s2508_s3, 3072, %s2210_s20, [#allocation12], %s2127_s1, %s2127_s1, %s2128_s18  }
  0x27   :  { %s2129_s24 = smov [#allocation14]   ;;  %s2130_s26 = smov [#allocation17]  }
  0x28   :  { %s86_s25 = sshll.u32 %s2129_s24, 4  ;;  %s105_s27 = sshll.u32 %s2130_s26, 4  ;;  %s87_s25 = int_to_ptr.vmem [resolvable:$true] %s86_s25  ;;  %s2244_s27 = int_to_ptr.vmem [resolvable:$true] %s105_s27 }
  0x29   :  { %s1883_s30 = scalar_lea.hbm %s2510_s5, 64 }
  0x2a   :  { %p1884_p2 = scmp.ne.s32.totalorder %s2510_s5, %s1883_s30  ;;  %p1887_p3 = scmp.lt.u32.totalorder %s1883_s30, %s2510_s5 }
  0x2c   :  { %p1889_p4 = pnand %p1887_p3, %p1884_p2 }
  0x2e   :  { %1892 = shalt.err (!%p1889_p4)
}
  0x2f   :  { %s1893_s3 = scalar_lea.vmem %s87_s25, 64  ;;  %p1898_p6 = scmp.lt.s32.totalorder %s87_s25, %s87_s25 }
  0x30   :  { %p1894_p5 = scmp.ne.s32.totalorder %s87_s25, %s1893_s3  ;;  %p1899_p7 = scmp.lt.s32.totalorder %s1893_s3, %s1893_s3 }
  0x32   :  { %p1900_p8 = por %p1899_p7, %p1898_p6 }
  0x34   :  { %p1901_p9 = pnand %p1900_p8, %p1894_p5 }
  0x36   :  { %1904 = shalt.err (!%p1901_p9)
}
  0x37   :  { %89 = dma.hbm_to_vmem [thread:$0]  %s2510_s5, 64, %s87_s25, [#allocation15]  }
  0x38   :  { %s1905_s21 = scalar_lea.hbm %s2512_s7, 4096 }
  0x39   :  { %p1906_p10 = scmp.ne.s32.totalorder %s2512_s7, %s1905_s21  ;;  %p1909_p11 = scmp.lt.u32.totalorder %s1905_s21, %s2512_s7 }
  0x3b   :  { %p1911_p12 = pnand %p1909_p11, %p1906_p10 }
  0x3d   :  { %1914 = shalt.err (!%p1911_p12)
}
  0x3e   :  { %s1915_s28 = scalar_lea.vmem %s2244_s27, 4096  ;;  %p1920_p0 = scmp.lt.s32.totalorder %s2244_s27, %s2244_s27 }
  0x3f   :  { %p1916_p13 = scmp.ne.s32.totalorder %s2244_s27, %s1915_s28  ;;  %p1921_p1 = scmp.lt.s32.totalorder %s1915_s28, %s1915_s28 }
  0x41   :  { %p1922_p2 = por %p1921_p1, %p1920_p0 }
  0x43   :  { %p1923_p3 = pnand %p1922_p2, %p1916_p13 }
  0x45   :  { %1926 = shalt.err (!%p1923_p3)
}
  0x46   :  { %s2131_s5 = smov 128   ;;  %s2132_s25 = smov 8  }
  0x47   :  { %111 = dma.hbm_to_vmem [thread:$0]  %s2512_s7, 4096, %s2244_s27, [#allocation18], %s2131_s5, %s2131_s5, %s2132_s25  }
  0x48   :  { %s2133_s12 = smov [#allocation5]   ;;  %s2134_s14 = smov [#allocation10]  }
  0x49   :  { %s30_s13 = sshll.u32 %s2133_s12, 4  ;;  %s49_s15 = sshll.u32 %s2134_s14, 4  ;;  %s31_s13 = int_to_ptr.vmem [resolvable:$true] %s30_s13  ;;  %s2275_s15 = int_to_ptr.vmem [resolvable:$true] %s49_s15 }
  0x4a   :  { %s1927_s16 = scalar_lea.hbm %s2505_s0, 16 }
  0x4b   :  { %p1928_p4 = scmp.ne.s32.totalorder %s2505_s0, %s1927_s16  ;;  %p1931_p5 = scmp.lt.u32.totalorder %s1927_s16, %s2505_s0 }
  0x4d   :  { %p1933_p6 = pnand %p1931_p5, %p1928_p4 }
  0x4f   :  { %1936 = shalt.err (!%p1933_p6)
}
  0x50   :  { %s1937_s7 = scalar_lea.vmem %s31_s13, 16  ;;  %s1941_s27 = scalar_lea.vmem %s31_s13, 32 }
  0x51   :  { %p1938_p7 = scmp.ne.s32.totalorder %s31_s13, %s1937_s7  ;;  %p1942_p8 = scmp.lt.s32.totalorder %s31_s13, %s31_s13 }
  0x52   :  { %p1943_p9 = scmp.lt.s32.totalorder %s1941_s27, %s1937_s7 }
  0x54   :  { %p1944_p10 = por %p1943_p9, %p1942_p8 }
  0x56   :  { %p1945_p11 = pnand %p1944_p10, %p1938_p7 }
  0x58   :  { %1948 = shalt.err (!%p1945_p11)
}
  0x59   :  { %33 = dma.hbm_to_vmem [thread:$0]  %s2505_s0, 16, %s31_s13, [#allocation6]  }
  0x5a   :  { %s1949_s5 = scalar_lea.hbm %s2507_s2, 2048 }
  0x5b   :  { %p1950_p12 = scmp.ne.s32.totalorder %s2507_s2, %s1949_s5  ;;  %p1953_p13 = scmp.lt.u32.totalorder %s1949_s5, %s2507_s2 }
  0x5d   :  { %p1955_p0 = pnand %p1953_p13, %p1950_p12 }
  0x5f   :  { %1958 = shalt.err (!%p1955_p0)
}
  0x60   :  { %s1959_s14 = scalar_lea.vmem %s2275_s15, 2048  ;;  %p1964_p2 = scmp.lt.s32.totalorder %s2275_s15, %s2275_s15 }
  0x61   :  { %p1960_p1 = scmp.ne.s32.totalorder %s2275_s15, %s1959_s14  ;;  %p1965_p3 = scmp.lt.s32.totalorder %s1959_s14, %s1959_s14 }
  0x63   :  { %p1966_p4 = por %p1965_p3, %p1964_p2 }
  0x65   :  { %p1967_p5 = pnand %p1966_p4, %p1960_p1 }
  0x67   :  { %1970 = shalt.err (!%p1967_p5)
}
  0x68   :  { %s2135_s0 = smov 64   ;;  %s2136_s13 = smov 4  }
  0x69   :  { %55 = dma.hbm_to_vmem [thread:$0]  %s2507_s2, 2048, %s2275_s15, [#allocation9], %s2135_s0, %s2135_s0, %s2136_s13  }
  0x6a   :  { %s2137_s16 = smov [#allocation13]   ;;  %s2138_s19 = smov [#allocation16]  }
  0x6b   :  { %s73_s17 = sshll.u32 %s2137_s16, 4  ;;  %s96_s21 = sshll.u32 %s2138_s19, 4  ;;  %s74_s17 = int_to_ptr.vmem [resolvable:$true] %s73_s17  ;;  %s97_s21 = int_to_ptr.vmem [resolvable:$true] %s96_s21 }
  0x6c   :  { %s1971_s27 = scalar_lea.hbm %s2509_s4, 3072 }
  0x6d   :  { %p1972_p6 = scmp.ne.s32.totalorder %s2509_s4, %s1971_s27  ;;  %p1975_p7 = scmp.lt.u32.totalorder %s1971_s27, %s2509_s4 }
  0x6f   :  { %p1977_p8 = pnand %p1975_p7, %p1972_p6 }
  0x71   :  { %1980 = shalt.err (!%p1977_p8)
}
  0x72   :  { %s1981_s2 = scalar_lea.vmem %s74_s17, 3072  ;;  %p1986_p10 = scmp.lt.s32.totalorder %s74_s17, %s74_s17 }
  0x73   :  { %p1982_p9 = scmp.ne.s32.totalorder %s74_s17, %s1981_s2  ;;  %p1987_p11 = scmp.lt.s32.totalorder %s1981_s2, %s1981_s2 }
  0x75   :  { %p1988_p12 = por %p1987_p11, %p1986_p10 }
  0x77   :  { %p1989_p13 = pnand %p1988_p12, %p1982_p9 }
  0x79   :  { %1992 = shalt.err (!%p1989_p13)
}
  0x7a   :  { %79 = dma.hbm_to_vmem [thread:$0]  %s2509_s4, 3072, %s74_s17, [#allocation12], %s2127_s1, %s2127_s1, %s2128_s18  }
  0x7b   :  { %s1993_s30 = scalar_lea.hbm %s2511_s6, 48 }
  0x7c   :  { %p1994_p0 = scmp.ne.s32.totalorder %s2511_s6, %s1993_s30  ;;  %p1997_p1 = scmp.lt.u32.totalorder %s1993_s30, %s2511_s6 }
  0x7e   :  { %p1999_p2 = pnand %p1997_p1, %p1994_p0 }
  0x80   :  { %2002 = shalt.err (!%p1999_p2)
}
  0x81   :  { %s2003_s3 = scalar_lea.vmem %s97_s21, 48  ;;  %s2007_s20 = scalar_lea.vmem %s97_s21, 64 }
  0x82   :  { %p2004_p3 = scmp.ne.s32.totalorder %s97_s21, %s2003_s3  ;;  %p2008_p4 = scmp.lt.s32.totalorder %s97_s21, %s97_s21 }
  0x83   :  { %p2009_p5 = scmp.lt.s32.totalorder %s2007_s20, %s2003_s3 }
  0x85   :  { %p2010_p6 = por %p2009_p5, %p2008_p4 }
  0x87   :  { %p2011_p7 = pnand %p2010_p6, %p2004_p3 }
  0x89   :  { %2014 = shalt.err (!%p2011_p7)
}
  0x8a   :  { %99 = dma.hbm_to_vmem [thread:$0]  %s2511_s6, 48, %s97_s21, [#allocation15]  }
  0x8b   :  { %s2139_s18 = smov [#allocation19]   ;;  %s2015_s22 = scalar_lea.hbm %s2513_s8, 32 }
  0x8c   :  { %s118_s16 = sshll.u32 %s2139_s18, 4  ;;  %p2016_p8 = scmp.ne.s32.totalorder %s2513_s8, %s2015_s22  ;;  %s119_s16 = int_to_ptr.vmem [resolvable:$true] %s118_s16 }
  0x8d   :  { %p2019_p9 = scmp.lt.u32.totalorder %s2015_s22, %s2513_s8 }
  0x8f   :  { %p2021_p10 = pnand %p2019_p9, %p2016_p8 }
  0x91   :  { %2024 = shalt.err (!%p2021_p10)
}
  0x92   :  { %s2025_s26 = scalar_lea.vmem %s119_s16, 32  ;;  %p2030_p12 = scmp.lt.s32.totalorder %s119_s16, %s119_s16 }
  0x93   :  { %p2026_p11 = scmp.ne.s32.totalorder %s119_s16, %s2025_s26  ;;  %p2031_p13 = scmp.lt.s32.totalorder %s2025_s26, %s2025_s26 }
  0x95   :  { %p2032_p0 = por %p2031_p13, %p2030_p12 }
  0x97   :  { %p2033_p1 = pnand %p2032_p0, %p2026_p11 }
  0x99   :  { %2036 = shalt.err (!%p2033_p1)
}
  0x9a   :  { %121 = dma.hbm_to_vmem [thread:$0]  %s2513_s8, 32, %s119_s16, [#allocation18]  }
  0x9b   :  { %2107 = dma.done.wait [#allocation6], 16  }
  0x9c   :  { %2108 = vsyncadd [#allocation6], 4294967280 }
  0x9d   :  { %2109 = dma.done.wait [#allocation9], 2176  }
  0x9e   :  { %2110 = vsyncadd [#allocation9], 4294965120 }
  0x9f   :  { %2111 = dma.done.wait [#allocation12], 6144  }
  0xa0   :  { %2112 = vsyncadd [#allocation12], 4294961152 }
  0xa1   :  { %2113 = dma.done.wait [#allocation15], 112  }
  0xa2   :  { %2114 = vsyncadd [#allocation15], 4294967184 }
  0xa3   :  { %2115 = dma.done.wait [#allocation18], 4128  }
  0xa4   :  { %2116 = vsyncadd [#allocation18], 4294963168  ;;  %v150_v0 = vlaneseq  ;;  %s2140_s28 = smov 0   ;;  %v2141_v1 = vmov 1966171168   ;;  %vm186_vm0 = vcmask 40960  }
  0xa5   :  { %156 = sst [smem:[#allocation4]] %s2140_s28  ;;  %v165_v2 = vunpack.c.l.s4 %v2141_v1  ;;  %vm188_vm1 = vcmask 62464   ;;  %v2142_v5 = vmov 2   ;;  %v2143_v6 = vmov 0.0   ;;  %v2358_v12 = vld [vmem:[#allocation16] sm:$0x7] }
  0xa6   :  { %v2345_v3 = vand.u32 127, %v150_v0  ;;  %v2347_v4 = vshrl.u32 %v150_v0, 7  ;;  %187 = vst.msk [vmem:[#allocation20] sm:$0x1] %vm186_vm0, %v2142_v5  ;;  %v2360_v13 = vld [vmem:[#allocation8] sm:$0xff]  ;;  %vm2365_vm3 = vcmp.lt.s32.totalorder %v150_v0, 256 }
  0xa7   :  { %189 = vst.msk [vmem:[#allocation23] sm:$0x3f] %vm188_vm1, %v2143_v6  ;;  %v166_v7 = vunpack.c.0.s8 %v165_v2  ;;  %v184_v14 = vld [vmem:[#allocation5] sm:$0x1]  ;;  %v192_v15 = vpack.c.bf16 %v2360_v13, %v2360_v13  ;;  %s2372_s8 = smov 0  }
  0xa8   :  { %v2352_v8 = vadd.s32 128, %v2345_v3  ;;  %vm157_vm2 = vcmp.eq.s32.totalorder %v2345_v3, 1  ;;  %185 = vst [vmem:[#allocation3] sm:$0x1] %v184_v14 }
  0xa9   :  { %v159_v9 = vsel %vm157_vm2, 1.0, %v2143_v6  ;;  %v2356_v10 = vsub.s32 %v166_v7, %v2347_v4 }
  0xaa   :  { %v163_v11 = vcombine.low %v159_v9, %v2143_v6 }
  0xac   :  { %v170_v16 = vrot.slane %v163_v11, %v2356_v10 }
  0xae   :  { %v177_v18 = vrot.slane %v170_v16, %v2356_v10 }
  0xb0   :  { %183 = vst.msk [vmem:[#allocation2] sm:$0x3] %vm2365_vm3, %v177_v18 }
  0xb1 LB: > { %s199_s2 = sld [smem:[#allocation4]]  ;;  %s2123_s8 = sphi %s2372_s8, %s198_s8  }
  0xb7   : > { %p1459_p2 = scmp.ne.s32.totalorder %s199_s2, %s2123_s8 }
  0xb8   : > { %v1691_v19 = vld [vmem:[#allocation10 + $0x40] sm:$0xff] (!%p1459_p2)   ;;  %v1693_v21 = vld [vmem:[#allocation10 + $0x48] sm:$0xff] (!%p1459_p2)   ;;  %v1695_v23 = vld [vmem:[#allocation10 + $0x50] sm:$0xff] (!%p1459_p2)   ;;  %v2379_v28 = vsub.s32 (!%p1459_p2), 1, %v2347_v4  ;;  %v2383_v41 = vsub.s32 (!%p1459_p2), 0, %v2347_v4  ;;  %vm2146_vm4 = vmmov (!%p1459_p2), 0  }
  0xb9   : > { %203 = sbr.rel (%p1459_p2) target bundleno = 2324 (0x914), region = 84  ;;  %v1692_v20 = vld [vmem:[#allocation10] sm:$0xff] (!%p1459_p2)   ;;  %1560 = vmatprep.subr.bf16.mxu0 (!%p1459_p2), %v1691_v19  ;;  %v1694_v22 = vld [vmem:[#allocation10 + $0x8] sm:$0xff] (!%p1459_p2)   ;;  %v1696_v24 = vld [vmem:[#allocation10 + $0x10] sm:$0xff] (!%p1459_p2)   ;;  %v2144_v19 = vmov (!%p1459_p2), 0   ;;  %vm920_vm5 = vcmask (!%p1459_p2), 1040384  }
  0xba   : > { %1561 = vmatpush3.bf16.msra.mxu0 (!%p1459_p2), %v1692_v20  ;;  %v1697_v25 = vld [vmem:[#allocation10 + $0x58] sm:$0xff] (!%p1459_p2)   ;;  %v1699_v27 = vld [vmem:[#allocation10 + $0x60] sm:$0xff] (!%p1459_p2)   ;;  %v1701_v30 = vld [vmem:[#allocation10 + $0x68] sm:$0xff] (!%p1459_p2)   ;;  %v2145_v20 = vmov (!%p1459_p2), 0.0   ;;  %822 = vmatprep.mubr.bf16.mxu1 (!%p1459_p2), %v2144_v19  ;;  %vm1003_vm6 = vcmask (!%p1459_p2), 57344   ;;  %vm1020_vm7 = vcmask (!%p1459_p2), 1043456  }
  0xbb   : > { %1562 = vmatprep.subr.bf16.mxu0 (!%p1459_p2), %v1693_v21  ;;  %v1698_v26 = vld [vmem:[#allocation10 + $0x18] sm:$0xff] (!%p1459_p2)   ;;  %v1700_v29 = vld [vmem:[#allocation10 + $0x20] sm:$0xff] (!%p1459_p2)   ;;  %v204_v31 = vld [vmem:[#allocation2] sm:$0x3] (!%p1459_p2)  ;;  %1690 = vset.pattern.permute.xlu0 (!%p1459_p2), %v2144_v19  ;;  %vm1016_vm8 = vcmask (!%p1459_p2), 64512  }
  0xbc   : > { %v214_v32 = vrot.slane (!%p1459_p2), %v204_v31, %v2379_v28  ;;  %v1710_v33 = vld [vmem:[#allocation13 + $0x4] ss:$12 sps:$4 sm:$0xff] (!%p1459_p2)   ;;  %v1712_v34 = vld [vmem:[#allocation13] ss:$12 sps:$4 sm:$0xff] (!%p1459_p2)   ;;  %v1716_v38 = vld [vmem:[#allocation13 + $0x1c] ss:$12 sps:$4 sm:$0xff] (!%p1459_p2)   ;;  %v210_v45 = vrot.slane (!%p1459_p2), %v204_v31, %v2383_v41 }
  0xbd   : > { %v1702_v35 = vld [vmem:[#allocation10 + $0x28] sm:$0xff] (!%p1459_p2)   ;;  %v1703_v37 = vld [vmem:[#allocation10 + $0x70] sm:$0xff] (!%p1459_p2)   ;;  %790 = vmatprep.subr.bf16.mxu1 (!%p1459_p2), %v1710_v33  ;;  %v1718_v39 = vld [vmem:[#allocation13 + $0x18] ss:$12 sps:$4 sm:$0xff] (!%p1459_p2)  }
  0xbe   : > { %1563 = vmatpush3.bf16.msra.mxu0 (!%p1459_p2), %v1694_v22  ;;  %v218_v36 = vpack.c.bf16 (!%p1459_p2), %v214_v32, %v214_v32  ;;  %791 = vmatpush1.bf16.msra.mxu1 (!%p1459_p2), %v1712_v34  ;;  %v1704_v40 = vld [vmem:[#allocation10 + $0x30] sm:$0xff] (!%p1459_p2)   ;;  %v1705_v43 = vld [vmem:[#allocation10 + $0x78] sm:$0xff] (!%p1459_p2)   ;;  %v217_v50 = vpack.c.bf16 (!%p1459_p2), %v210_v45, %v210_v45  ;;  %v1707_v52 = vld [vmem:[#allocation11] ss:$12 sps:$4 sm:$0xff] (!%p1459_p2)  }
  0xbf   : > { %1564 = vmatprep.subr.bf16.mxu0 (!%p1459_p2), %v1695_v23  ;;  %792 = vmatprep.subr.bf16.mxu1 (!%p1459_p2), %v1716_v38  ;;  %v1722_v42 = vld [vmem:[#allocation13 + $0x34] ss:$12 sps:$4 sm:$0xff] (!%p1459_p2)   ;;  %v1724_v44 = vld [vmem:[#allocation13 + $0x30] ss:$12 sps:$4 sm:$0xff] (!%p1459_p2)   ;;  %v1728_v46 = vld [vmem:[#allocation13 + $0x4c] ss:$12 sps:$4 sm:$0xff] (!%p1459_p2)  }
  0xc0   : > { %379 = vmatprep.mubr.bf16.mxu0 %v218_v36  ;;  %v1706_v47 = vld [vmem:[#allocation10 + $0x38] sm:$0xff]   ;;  %v1709_v48 = vld [vmem:[#allocation11 + $0x4] ss:$12 sps:$4 sm:$0xff]   ;;  %v1730_v49 = vld [vmem:[#allocation13 + $0x48] ss:$12 sps:$4 sm:$0xff]  }
  0xc1   : > { %v1734_v51 = vld [vmem:[#allocation13 + $0x64] ss:$12 sps:$4 sm:$0xff]   ;;  %v1715_v53 = vld [vmem:[#allocation11 + $0x1c] ss:$12 sps:$4 sm:$0xff]   ;;  %v1736_v55 = vld [vmem:[#allocation13 + $0x60] ss:$12 sps:$4 sm:$0xff]  }
  0xc2   : > { %1565 = vmatpush3.bf16.msra.mxu0 %v1696_v24  ;;  %793 = vmatpush1.bf16.msra.mxu1 %v1718_v39  ;;  %v1713_v54 = vld [vmem:[#allocation11 + $0x18] ss:$12 sps:$4 sm:$0xff]   ;;  %v1721_v56 = vld [vmem:[#allocation11 + $0x34] ss:$12 sps:$4 sm:$0xff]   ;;  %v1740_v57 = vld [vmem:[#allocation13 + $0x7c] ss:$12 sps:$4 sm:$0xff]  }
  0xc3   : > { %1566 = vmatprep.subr.bf16.mxu0 %v1697_v25  ;;  %794 = vmatprep.subr.bf16.mxu1 %v1722_v42  ;;  %v1742_v58 = vld [vmem:[#allocation13 + $0x78] ss:$12 sps:$4 sm:$0xff]   ;;  %v1746_v59 = vld [vmem:[#allocation13 + $0x94] ss:$12 sps:$4 sm:$0xff]   ;;  %v1719_v60 = vld [vmem:[#allocation11 + $0x30] ss:$12 sps:$4 sm:$0xff]  }
  0xc4   : > { %v1727_v61 = vld [vmem:[#allocation11 + $0x4c] ss:$12 sps:$4 sm:$0xff]   ;;  %v1748_v62 = vld [vmem:[#allocation13 + $0x90] ss:$12 sps:$4 sm:$0xff]   ;;  %v1725_v63 = vld [vmem:[#allocation11 + $0x48] ss:$12 sps:$4 sm:$0xff]  }
  0xc5   : > { %v1733_v0 = vld [vmem:[#allocation11 + $0x64] ss:$12 sps:$4 sm:$0xff]   ;;  %v1731_v1 = vld [vmem:[#allocation11 + $0x60] ss:$12 sps:$4 sm:$0xff]   ;;  %v1739_v2 = vld [vmem:[#allocation11 + $0x7c] ss:$12 sps:$4 sm:$0xff]  }
  0xc6   : > { %1567 = vmatpush3.bf16.msra.mxu0 %v1698_v26  ;;  %795 = vmatpush1.bf16.msra.mxu1 %v1724_v44  ;;  %v1737_v5 = vld [vmem:[#allocation11 + $0x78] ss:$12 sps:$4 sm:$0xff]   ;;  %v1745_v6 = vld [vmem:[#allocation11 + $0x94] ss:$12 sps:$4 sm:$0xff]   ;;  %v1743_v7 = vld [vmem:[#allocation11 + $0x90] ss:$12 sps:$4 sm:$0xff]  }
  0xc7   : > { %1568 = vmatprep.subr.bf16.mxu0 %v1699_v27  ;;  %796 = vmatprep.subr.bf16.mxu1 %v1728_v46  ;;  %v1751_v9 = vld [vmem:[#allocation11 + $0xac] ss:$12 sps:$4 sm:$0xff]   ;;  %v1749_v11 = vld [vmem:[#allocation11 + $0xa8] ss:$12 sps:$4 sm:$0xff]   ;;  %v1758_v32 = vld [vmem:[#allocation11 + $0x50] ss:$12 sps:$4 sm:$0xff]  }
  0xc8   : > { %v1752_v14 = vld [vmem:[#allocation13 + $0xac] ss:$12 sps:$4 sm:$0xff]   ;;  %v1754_v16 = vld [vmem:[#allocation13 + $0xa8] ss:$12 sps:$4 sm:$0xff]   ;;  %v1762_v36 = vld [vmem:[#allocation11 + $0xb0] ss:$12 sps:$4 sm:$0xff]  }
  0xc9   : > { %v2386_v18 = vld [vmem:[#allocation3] sm:$0x1]  ;;  %v1757_v31 = vld [vmem:[#allocation11 + $0x38] ss:$12 sps:$4 sm:$0xff]   ;;  %v1760_v34 = vld [vmem:[#allocation11 + $0x80] ss:$12 sps:$4 sm:$0xff]  }
  0xca   : > { %1569 = vmatpush3.bf16.msra.mxu0 %v1700_v29  ;;  %797 = vmatpush1.bf16.msra.mxu1 %v1730_v49  ;;  %v2391_v21 = vpack.c.bf16 %v2386_v18, %v2386_v18  ;;  %v1755_v27 = vld [vmem:[#allocation11 + $0x8] ss:$12 sps:$4 sm:$0xff]   ;;  %v1764_v38 = vld [vmem:[#allocation13 + $0x20] ss:$12 sps:$4 sm:$0xff]   ;;  %v1765_v39 = vld [vmem:[#allocation13 + $0x38] ss:$12 sps:$4 sm:$0xff]  }
  0xcb   : > { %1570 = vmatprep.subr.bf16.mxu0 %v1701_v30  ;;  %798 = vmatprep.subr.bf16.mxu1 %v1734_v51  ;;  %v1756_v30 = vld [vmem:[#allocation11 + $0x20] ss:$12 sps:$4 sm:$0xff]   ;;  %v1759_v33 = vld [vmem:[#allocation11 + $0x68] ss:$12 sps:$4 sm:$0xff]   ;;  %v1769_v44 = vld [vmem:[#allocation13 + $0x98] ss:$12 sps:$4 sm:$0xff]  }
  0xcc   : > { %v1767_v42 = vld [vmem:[#allocation13 + $0x68] ss:$12 sps:$4 sm:$0xff]   ;;  %v1770_v45 = vld [vmem:[#allocation13 + $0xb0] ss:$12 sps:$4 sm:$0xff]  }
  0xce   : > { %1571 = vmatpush3.bf16.msra.mxu0 %v1702_v35  ;;  %799 = vmatpush1.bf16.msra.mxu1 %v1736_v55  ;;  %v1761_v35 = vld [vmem:[#allocation11 + $0x98] ss:$12 sps:$4 sm:$0xff]  }
  0xcf   : > { %1572 = vmatprep.subr.bf16.mxu0 %v1703_v37  ;;  %800 = vmatprep.subr.bf16.mxu1 %v1740_v57  ;;  %v1763_v37 = vld [vmem:[#allocation13 + $0x8] ss:$12 sps:$4 sm:$0xff]  }
  0xd2   : > { %1573 = vmatpush3.bf16.msra.mxu0 %v1704_v40  ;;  %801 = vmatpush1.bf16.msra.mxu1 %v1742_v58  ;;  %v1766_v40 = vld [vmem:[#allocation13 + $0x50] ss:$12 sps:$4 sm:$0xff]   ;;  %v871_v58 = vld [vmem:[#allocation14] sm:$0xf] }
  0xd3   : > { %1574 = vmatprep.subr.bf16.mxu0 %v1705_v43  ;;  %802 = vmatprep.subr.bf16.mxu1 %v1746_v59  ;;  %v1768_v43 = vld [vmem:[#allocation13 + $0x80] ss:$12 sps:$4 sm:$0xff]  }
  0xd6   : > { %1575 = vmatpush3.bf16.msra.mxu0 %v1706_v47  ;;  %803 = vmatpush1.bf16.msra.mxu1 %v1748_v62 }
  0xd7   : > { %548 = vmatprep.subr.bf16.mxu0 %v1709_v48  ;;  %804 = vmatprep.subr.bf16.mxu1 %v1752_v14 }
  0xd9   : > { %380 = vmatmul.mubr.bf16.vlgmr.msra.gmra.mrb[0].mxu0 %v217_v50 }
  0xda   : > { %549 = vmatpush1.bf16.msra.mxu0 %v1707_v52  ;;  %805 = vmatpush1.bf16.msra.mxu1 %v1754_v16 }
  0xdb   : > { %550 = vmatprep.subr.bf16.mxu0 %v1715_v53  ;;  %580 = vmatprep.mubr.bf16.mxu0 %v2144_v19 }
  0xdc   : > { %1644 = vmatprep.subr.mxu1 %v2145_v20 }
  0xdd   : > { %823 = vmatmul.mubr.bf16.vlgmr.msra.gmra.mrb[0].mxu1 %v2391_v21 }
  0xde   : > { %551 = vmatpush1.bf16.msra.mxu0 %v1713_v54  ;;  %1646 = vmatprep.mubr.msk.f32.mxu1 %vm2146_vm4, %v2145_v20 }
  0xdf   : > { %552 = vmatprep.subr.bf16.mxu0 %v1721_v56 }
  0xe2   : > { %553 = vmatpush1.bf16.msra.mxu0 %v1719_v60 }
  0xe3   : > { %554 = vmatprep.subr.bf16.mxu0 %v1727_v61  ;;  %1645 = vmatpush3.xpose.msra.mxu1 %v2360_v13 }
  0xe4   : > { %1649 = vmatprep.subr.bf16.mxu1 %v2145_v20 }
  0xe6   : > { %555 = vmatpush1.bf16.msra.mxu0 %v1725_v63  ;;  %1647 = vmatmul.mubr.f32.vlgmr.msra.gmra.mrb[4].mxu1 %v2358_v12 }
  0xe7   : > { %556 = vmatprep.subr.bf16.mxu0 %v1733_v0  ;;  %1651 = vmatprep.mubr.msk.bf16.mxu1 %vm2146_vm4, %v2145_v20 }
  0xea   : > { %557 = vmatpush1.bf16.msra.mxu0 %v1731_v1  ;;  %v885_v1 = vrot.slane %v871_v58, %v2379_v28 }
  0xeb   : > { %558 = vmatprep.subr.bf16.mxu0 %v1739_v2 }
  0xee   : > { %559 = vmatpush1.bf16.msra.mxu0 %v1737_v5 }
  0xef   : > { %560 = vmatprep.subr.bf16.mxu0 %v1745_v6 }
  0xf2   : > { %561 = vmatpush1.bf16.msra.mxu0 %v1743_v7 }
  0xf3   : > { %562 = vmatprep.subr.bf16.mxu0 %v1751_v9  ;;  %v902_v9 = vsub.s32 3, %v2347_v4 }
  0xf5   : > { %v903_v16 = vrot.slane %v871_v58, %v902_v9  ;;  %v1794_v9 = vld [vmem:[#allocation17 + $0x74] ss:$8 sps:$4 sm:$0xff]  }
  0xf6   : > { %563 = vmatpush1.bf16.msra.mxu0 %v1749_v11  ;;  %v896_v11 = vsub.s32 2, %v2347_v4 }
  0xf7   : > { %1604 = vmatprep.subr.bf16.mxu0 %v2145_v20 }
 0x1ac   : > { %v1576_v22 = vpop.f32.mrb[0].mxu0 }
 0x1ad   : > { %v1577_v23 = vpop.f32.mrb[1].mxu0 }
 0x1ae   : > { %v1578_v24 = vadd.f32 %v1577_v23, %v1576_v22  ;;  %v1579_v25 = vpop.f32.mrb[2].mxu0 }
 0x1af   : > { %v1580_v26 = vpop.f32.mrb[3].mxu0 }
 0x1b0   : > { %v387_v29 = vpack.c.bf16 %v1578_v24, %v1578_v24  ;;  %v824_v46 = vpop.f32.mrb[0].mxu1 }
 0x1b1   : > { %v826_v47 = vpop.f32.mrb[1].mxu1 }
 0x1b2   : > { %581 = vmatmul.mubr.bf16.vlgmr.msra.gmra.mrb[4].mxu0 %v387_v29  ;;  %v828_v48 = vpop.f32.mrb[2].mxu1 }
 0x1b3   : > { %1605 = vmatpush3.bf16.msra.mxu0 %v1755_v27  ;;  %1620 = vmatprep.mubr.msk.bf16.mxu0 %vm2146_vm4, %v2145_v20  ;;  %v829_v49 = vpop.f32.mrb[3].mxu1 }
 0x1b4   : > { %1606 = vmatprep.subr.bf16.mxu0 %v2145_v20 }
 0x1b7   : > { %1607 = vmatpush3.bf16.msra.mxu0 %v1756_v30 }
 0x1b8   : > { %1608 = vmatprep.subr.bf16.mxu0 %v2145_v20 }
 0x1b9   : > { %v990_v50 = vpop.f32.mrb[4].mxu1 }
 0x1ba   : > { %v1648_v51 = vpop.f32.mrb[5].mxu1 }
 0x1bb   : > { %1609 = vmatpush3.bf16.msra.mxu0 %v1757_v31 }
 0x1bc   : > { %1610 = vmatprep.subr.bf16.mxu0 %v2145_v20 }
 0x1bf   : > { %1611 = vmatpush3.bf16.msra.mxu0 %v1758_v32 }
 0x1c0   : > { %1612 = vmatprep.subr.bf16.mxu0 %v2145_v20 }
 0x1c3   : > { %1613 = vmatpush3.bf16.msra.mxu0 %v1759_v33 }
 0x1c4   : > { %1614 = vmatprep.subr.bf16.mxu0 %v2145_v20 }
 0x1c7   : > { %1615 = vmatpush3.bf16.msra.mxu0 %v1760_v34 }
 0x1c8   : > { %1616 = vmatprep.subr.bf16.mxu0 %v2145_v20 }
 0x1cb   : > { %1617 = vmatpush3.bf16.msra.mxu0 %v1761_v35 }
 0x1cc   : > { %1618 = vmatprep.subr.bf16.mxu0 %v2145_v20 }
 0x1cf   : > { %1619 = vmatpush3.bf16.msra.mxu0 %v1762_v36  ;;  %v917_v36 = vrot.slane %v2358_v12, %v2379_v28 }
 0x1d0   : > { %1624 = vmatprep.subr.bf16.mxu0 %v2145_v20 }
 0x1d2   : > { %1621 = vmatmul.mubr.bf16.vlgmr.msra.gmra.mrb[8].mxu0 %v387_v29 }
 0x1d3   : > { %1625 = vmatpush3.bf16.msra.mxu0 %v1763_v37  ;;  %1640 = vmatprep.mubr.msk.bf16.mxu0 %vm2146_vm4, %v2145_v20 }
 0x1d4   : > { %1626 = vmatprep.subr.bf16.mxu0 %v2145_v20 }
 0x1d7   : > { %1627 = vmatpush3.bf16.msra.mxu0 %v1764_v38 }
 0x1d8   : > { %1628 = vmatprep.subr.bf16.mxu0 %v2145_v20 }
 0x1db   : > { %1629 = vmatpush3.bf16.msra.mxu0 %v1765_v39 }
 0x1dc   : > { %1630 = vmatprep.subr.bf16.mxu0 %v2145_v20 }
 0x1df   : > { %1631 = vmatpush3.bf16.msra.mxu0 %v1766_v40 }
 0x1e0   : > { %1632 = vmatprep.subr.bf16.mxu0 %v2145_v20 }
 0x1e3   : > { %1633 = vmatpush3.bf16.msra.mxu0 %v1767_v42 }
 0x1e4   : > { %1634 = vmatprep.subr.bf16.mxu0 %v2145_v20 }
 0x1e7   : > { %1635 = vmatpush3.bf16.msra.mxu0 %v1768_v43 }
 0x1e8   : > { %1636 = vmatprep.subr.bf16.mxu0 %v2145_v20 }
 0x1eb   : > { %1637 = vmatpush3.bf16.msra.mxu0 %v1769_v44 }
 0x1ec   : > { %1638 = vmatprep.subr.bf16.mxu0 %v2145_v20  ;;  %v897_v20 = vrot.slane %v871_v58, %v896_v11 }
 0x1ef   : > { %1639 = vmatpush3.bf16.msra.mxu0 %v1770_v45 }
 0x1f2   : > { %1641 = vmatmul.mubr.bf16.vlgmr.msra.gmra.mrb[12].mxu0 %v2391_v21 }
 0x285   : > { %v582_v52 = vpop.f32.mrb[4].mxu0 }
 0x286   : > { %v872_v53 = vadd.f32 %v824_v46, %v582_v52  ;;  %v584_v54 = vpop.f32.mrb[5].mxu0  ;;  %v1022_v52 = vsel %vm1020_vm7, %v192_v15, 0 }
 0x287   : > { %v880_v55 = vadd.f32 %v826_v47, %v584_v54  ;;  %v586_v56 = vpop.f32.mrb[6].mxu0  ;;  %1650 = vmatpush3.bf16.msra.mxu1 %v1022_v52 }
 0x288   : > { %v587_v57 = vpop.f32.mrb[7].mxu0  ;;  %v873_v59 = vadd.f32 %v872_v53, %v871_v58  ;;  %v1773_v53 = vld [vmem:[#allocation17 + $0x4] ss:$8 sps:$4 sm:$0xff]   ;;  %v1771_v56 = vld [vmem:[#allocation17] ss:$8 sps:$4 sm:$0xff]  }
 0x289   : > { %v887_v2 = vadd.f32 %v885_v1, %v880_v55  ;;  %1270 = vmatprep.subr.bf16.mxu1 %v1773_v53  ;;  %v1776_v58 = vld [vmem:[#allocation17 + $0x14] ss:$8 sps:$4 sm:$0xff]   ;;  %v1783_v1 = vld [vmem:[#allocation17 + $0x40] ss:$8 sps:$4 sm:$0xff]  }
 0x28a   : > { %v1524_v63 = vmul.f32 -1.442695, %v873_v59  ;;  %v1774_v59 = vld [vmem:[#allocation17 + $0x10] ss:$8 sps:$4 sm:$0xff]  }
 0x28b   : > { %v1525_v5 = vmul.f32 -1.442695, %v887_v2  ;;  %v1788_v2 = vld [vmem:[#allocation17 + $0x54] ss:$8 sps:$4 sm:$0xff]  }
 0x28c   : > { %1819 = vpow2.f32 %v1524_v63  ;;  %v1780_v63 = vld [vmem:[#allocation17 + $0x30] ss:$8 sps:$4 sm:$0xff]  }
 0x28d   : > { %1821 = vpow2.f32 %v1525_v5  ;;  %v1786_v5 = vld [vmem:[#allocation17 + $0x50] ss:$8 sps:$4 sm:$0xff]  }
 0x296   : > { %v1820_v6 = vpop.eup %1819 }
 0x297   : > { %v877_v7 = vadd.f32 1.0, %v1820_v6  ;;  %v1822_v14 = vpop.eup %1821  ;;  %v1791_v6 = vld [vmem:[#allocation17 + $0x64] ss:$8 sps:$4 sm:$0xff]  }
 0x298   : > { %v891_v19 = vadd.f32 1.0, %v1822_v14  ;;  %v1797_v14 = vld [vmem:[#allocation17 + $0x84] ss:$8 sps:$4 sm:$0xff]  }
 0x299   : > { %1823 = vrcp.f32 %v877_v7  ;;  %v1789_v7 = vld [vmem:[#allocation17 + $0x60] ss:$8 sps:$4 sm:$0xff]  }
 0x29a   : > { %1825 = vrcp.f32 %v891_v19  ;;  %v1800_v19 = vld [vmem:[#allocation17 + $0x94] ss:$8 sps:$4 sm:$0xff]  }
 0x2a3   : > { %v1824_v24 = vpop.eup %1823 }
 0x2a4   : > { %v1826_v31 = vpop.eup %1825 }
 0x2a5   : > { %v623_v60 = vpop.f32.mrb[8].mxu0  ;;  %v909_v32 = vsub.f32 1.0, %v1826_v31  ;;  %v911_v35 = vmul.f32 %v1826_v31, %v2386_v18  ;;  %v1813_v31 = vld [vmem:[#allocation17 + $0xe0] ss:$8 sps:$4 sm:$0xff]  }
 0x2a6   : > { %v1622_v61 = vpop.f32.mrb[9].mxu0  ;;  %v899_v26 = vadd.f32 %v897_v20, %v623_v60  ;;  %v1779_v60 = vld [vmem:[#allocation17 + $0x24] ss:$8 sps:$4 sm:$0xff]   ;;  %v1798_v20 = vld [vmem:[#allocation17 + $0x90] ss:$8 sps:$4 sm:$0xff]  }
 0x2a7   : > { %v626_v62 = vpop.f32.mrb[10].mxu0  ;;  %v1777_v61 = vld [vmem:[#allocation17 + $0x20] ss:$8 sps:$4 sm:$0xff]  }
 0x2a8   : > { %v1623_v0 = vpop.f32.mrb[11].mxu0  ;;  %v1782_v62 = vld [vmem:[#allocation17 + $0x34] ss:$8 sps:$4 sm:$0xff]  }
 0x2a9   : > { %v1785_v0 = vld [vmem:[#allocation17 + $0x44] ss:$8 sps:$4 sm:$0xff]  }
 0x2c5   : > { %v865_v21 = vpop.f32.mrb[12].mxu0 }
 0x2c6   : > { %v905_v22 = vadd.f32 %v903_v16, %v865_v21  ;;  %v1642_v23 = vpop.f32.mrb[13].mxu0  ;;  %v1795_v16 = vld [vmem:[#allocation17 + $0x80] ss:$8 sps:$4 sm:$0xff]   ;;  %v1803_v21 = vld [vmem:[#allocation17 + $0xa4] ss:$8 sps:$4 sm:$0xff]  }
 0x2c7   : > { %v868_v25 = vpop.f32.mrb[14].mxu0  ;;  %v1806_v23 = vld [vmem:[#allocation17 + $0xb4] ss:$8 sps:$4 sm:$0xff]  }
 0x2c8   : > { %v906_v27 = vmul.f32 %v1824_v24, %v905_v22  ;;  %v1643_v29 = vpop.f32.mrb[15].mxu0  ;;  %v1801_v22 = vld [vmem:[#allocation17 + $0xa0] ss:$8 sps:$4 sm:$0xff]   ;;  %v1804_v24 = vld [vmem:[#allocation17 + $0xb0] ss:$8 sps:$4 sm:$0xff]  }
 0x2c9   : > { %v1809_v25 = vld [vmem:[#allocation17 + $0xc4] ss:$8 sps:$4 sm:$0xff]   ;;  %v1810_v29 = vld [vmem:[#allocation17 + $0xd0] ss:$8 sps:$4 sm:$0xff]  }
 0x2ca   : > { %v907_v30 = vadd.f32 %v906_v27, %v899_v26  ;;  %v1807_v26 = vld [vmem:[#allocation17 + $0xc0] ss:$8 sps:$4 sm:$0xff]   ;;  %v1812_v27 = vld [vmem:[#allocation17 + $0xd4] ss:$8 sps:$4 sm:$0xff]  }
 0x2cc   : > { %1827 = vtanh.f32 %v907_v30  ;;  %v1815_v30 = vld [vmem:[#allocation17 + $0xe4] ss:$8 sps:$4 sm:$0xff]  }
 0x2d6   : > { %v1828_v33 = vpop.eup %1827 }
 0x2d7   : > { %v910_v34 = vmul.f32 %v1828_v33, %v909_v32  ;;  %v1818_v32 = vld [vmem:[#allocation17 + $0xf4] ss:$8 sps:$4 sm:$0xff]   ;;  %v1816_v33 = vld [vmem:[#allocation17 + $0xf0] ss:$8 sps:$4 sm:$0xff]  }
 0x2d9   : > { %v2428_v37 = vadd.f32 %v911_v35, %v910_v34 }
 0x2db   : > { %v919_v38 = vmul.f32 %v917_v36, %v2428_v37 }
 0x2dd   : > { %v921_v39 = vsel %vm920_vm5, %v919_v38, 0.0  ;;  %v1064_v38 = vpack.c.bf16 %v2428_v37, %v2428_v37 }
 0x2de   : > { %922 = vadd.xlane.f32.xlu0 %v921_v39 }
 0x2f4   : > { %995 = vperm.xlu0 %1690, %v2358_v12  }
 0x36b   : > { %v923_v40 = vpop.xlane.xlu0 %922 }
 0x36c   : > { %v991_v43 = vadd.f32 %v990_v50, %v923_v40 }
 0x373   : > { %v996_v42 = vpop.permute.xlu0 %995 }
 0x374   : > { %v1001_v44 = vrot.slane %v996_v42, %v896_v11  ;;  %v1792_v11 = vld [vmem:[#allocation17 + $0x70] ss:$8 sps:$4 sm:$0xff]   ;;  %v1098_v42 = vld [vmem:[#allocation19] sm:$0x3] }
 0x376   : > { %v1002_v45 = vadd.f32 %v1001_v44, %v991_v43  ;;  %v1263_v43 = vrot.slane %v1098_v42, %v2383_v41  ;;  %v1267_v44 = vrot.slane %v1098_v42, %v2379_v28 }
 0x378   : > { %v1004_v18 = vsel %vm1003_vm6, %v1002_v45, -inf }
 0x379   : > { %1005 = vmax.xlane.f32.xlu1 %v1004_v18 }
 0x406   : > { %v1006_v46 = vpop.xlane.xlu1 %1005 }
 0x407   : > { %v1007_v47 = vsub.f32 %v1002_v45, %v1006_v46 }
 0x409   : > { %v1008_v48 = vmul.f32 1.442695, %v1007_v47 }
 0x40b   : > { %1829 = vpow2.f32 %v1008_v48 }
 0x415   : > { %v1830_v49 = vpop.eup %1829 }
 0x416   : > { %v1010_v51 = vsel %vm1003_vm6, %v1830_v49, 0.0 }
 0x417   : > { %1011 = vadd.xlane.f32.xlu1 %v1010_v51 }
 0x4a4   : > { %v1012_v50 = vpop.xlane.xlu1 %1011 }
 0x4a5   : > { %1831 = vrcp.f32 %v1012_v50 }
 0x4af   : > { %v1832_v54 = vpop.eup %1831 }
 0x4b0   : > { %v2436_v55 = vmul.f32 %v1832_v54, %v1830_v49 }
 0x4b2   : > { %v1015_v57 = vpack.c.bf16 %v2436_v55, %v2436_v55 }
 0x4b4   : > { %1652 = vmatmul.mubr.msk.bf16.vlgmr.msra.gmra.mrb[8].mxu1 %vm1016_vm8, %v1015_v57 }
 0x4b5   : > { %1271 = vmatpush1.bf16.msra.mxu1 %v1771_v56 }
 0x4b6   : > { %1272 = vmatprep.subr.bf16.mxu1 %v1776_v58 }
 0x4b9   : > { %1273 = vmatpush1.bf16.msra.mxu1 %v1774_v59 }
 0x4ba   : > { %1274 = vmatprep.subr.bf16.mxu1 %v1779_v60 }
 0x4bd   : > { %1275 = vmatpush1.bf16.msra.mxu1 %v1777_v61 }
 0x4be   : > { %1276 = vmatprep.subr.bf16.mxu1 %v1782_v62 }
 0x4c1   : > { %1277 = vmatpush1.bf16.msra.mxu1 %v1780_v63 }
 0x4c2   : > { %1278 = vmatprep.subr.bf16.mxu1 %v1785_v0 }
 0x4c5   : > { %1279 = vmatpush1.bf16.msra.mxu1 %v1783_v1 }
 0x4c6   : > { %1280 = vmatprep.subr.bf16.mxu1 %v1788_v2 }
 0x4c9   : > { %1281 = vmatpush1.bf16.msra.mxu1 %v1786_v5 }
 0x4ca   : > { %1282 = vmatprep.subr.bf16.mxu1 %v1791_v6 }
 0x4cd   : > { %1283 = vmatpush1.bf16.msra.mxu1 %v1789_v7 }
 0x4ce   : > { %1284 = vmatprep.subr.bf16.mxu1 %v1794_v9 }
 0x4d1   : > { %1285 = vmatpush1.bf16.msra.mxu1 %v1792_v11 }
 0x4d2   : > { %1286 = vmatprep.subr.bf16.mxu1 %v1797_v14 }
 0x4d5   : > { %1287 = vmatpush1.bf16.msra.mxu1 %v1795_v16 }
 0x4d6   : > { %1288 = vmatprep.subr.bf16.mxu1 %v1800_v19 }
 0x4d9   : > { %1289 = vmatpush1.bf16.msra.mxu1 %v1798_v20 }
 0x4da   : > { %1290 = vmatprep.subr.bf16.mxu1 %v1803_v21 }
 0x4dd   : > { %1291 = vmatpush1.bf16.msra.mxu1 %v1801_v22 }
 0x4de   : > { %1292 = vmatprep.subr.bf16.mxu1 %v1806_v23 }
 0x4e1   : > { %1293 = vmatpush1.bf16.msra.mxu1 %v1804_v24 }
 0x4e2   : > { %1294 = vmatprep.subr.bf16.mxu1 %v1809_v25 }
 0x4e5   : > { %1295 = vmatpush1.bf16.msra.mxu1 %v1807_v26 }
 0x4e6   : > { %1296 = vmatprep.subr.bf16.mxu1 %v1812_v27 }
 0x4e9   : > { %1297 = vmatpush1.bf16.msra.mxu1 %v1810_v29 }
 0x4ea   : > { %1298 = vmatprep.subr.bf16.mxu1 %v1815_v30 }
 0x4ed   : > { %1299 = vmatpush1.bf16.msra.mxu1 %v1813_v31 }
 0x4ee   : > { %1300 = vmatprep.subr.bf16.mxu1 %v1818_v32 }
 0x4f1   : > { %1301 = vmatpush1.bf16.msra.mxu1 %v1816_v33 }
 0x587   : > { %v1058_v34 = vpop.f32.mrb[8].mxu1 }
 0x588   : > { %v1065_v35 = vpack.c.bf16 %v1058_v34, %v1058_v34  ;;  %v1653_v36 = vpop.f32.mrb[9].mxu1 }
 0x589   : > { %v1061_v39 = vpop.f32.mrb[10].mxu1 }
 0x58a   : > { %v1654_v40 = vpop.f32.mrb[11].mxu1  ;;  %1302 = vmatprep.mubr.bf16.mxu1 %v1065_v35 }
 0x58b   : > { %1303 = vmatmul.mubr.bf16.vlgmr.msra.gmra.mrb[12].mxu1 %v1064_v38 }
 0x65e   : > { %v1304_v45 = vpop.f32.mrb[12].mxu1 }
 0x65f   : > { %v1305_v18 = vadd.f32 %v1304_v45, %v1263_v43  ;;  %v1306_v46 = vpop.f32.mrb[13].mxu1 }
 0x660   : > { %v1307_v47 = vadd.f32 %v1306_v46, %v1267_v44  ;;  %v1308_v48 = vpop.f32.mrb[14].mxu1 }
 0x661   : > { %v1311_v49 = vmul.f32 10.0, %v1305_v18  ;;  %v1309_v51 = vpop.f32.mrb[15].mxu1 }
 0x662   : > { %v1312_v52 = vmul.f32 10.0, %v1307_v47 }
 0x663   : > { %v1313_v53 = vsel %vm920_vm5, %v1311_v49, -inf }
 0x664   : > { %v1314_v50 = vsel %vm920_vm5, %v1312_v52, -inf }
 0x665   : > { %v1315_v54 = vmax.f32 %v1313_v53, %v1314_v50 }
 0x667   : > { %1316 = vmax.xlane.f32.xlu1 %v1315_v54 }
 0x6f4   : > { %v1317_v56 = vpop.xlane.xlu1 %1316 }
 0x6f5   : > { %vm1318_vm9 = vcmp.eq.f32.partialorder %v1311_v49, %v1317_v56  ;;  %vm1319_vm10 = vcmp.eq.f32.partialorder %v1312_v52, %v1317_v56 }
 0x6f6   : > { %v1320_v57 = vsel %vm1318_vm9, %v2345_v3, 256  ;;  %v1321_v28 = vsel %vm1319_vm10, %v2352_v8, 256 }
 0x6f7   : > { %v1322_v58 = vsel %vm920_vm5, %v1320_v57, 2147483647  ;;  %v1323_v59 = vsel %vm920_vm5, %v1321_v28, 2147483647 }
 0x6f8   : > { %vm1324_vm11 = vcmp.lt.s32.totalorder %v1322_v58, %v1323_v59 }
 0x6f9   : > { %v1325_v60 = vsel %vm1324_vm11, %v1322_v58, %v1323_v59 }
 0x6fa   : > { %v1327_v61 = vshra.s32 %v1325_v60, 16  ;;  %v1326_v63 = vand.u32 65535, %v1325_v60 }
 0x6fc   : > { %v1329_v62 = vcvt.s32.f32 %v1327_v61  ;;  %v1328_v1 = vcvt.s32.f32 %v1326_v63 }
 0x6fe   : > { %1330 = vmin.xlane.f32.xlu1 %v1329_v62 }
 0x78b   : > { %v1331_v0 = vpop.xlane.xlu1 %1330 }
 0x78c   : > { %vm1332_vm12 = vcmp.eq.f32.partialorder %v1329_v62, %v1331_v0  ;;  %v1337_v5 = vcvt.f32.s32 %v1331_v0 }
 0x78d   : > { %v1333_v2 = vsel %vm1332_vm12, %v1328_v1, inf }
 0x78e   : > { %1334 = vmin.xlane.f32.xlu1 %v1333_v2  ;;  %v1338_v7 = vshll.u32 %v1337_v5, 16 }
 0x81b   : > { %v1335_v6 = vpop.xlane.xlu1 %1334 }
 0x81c   : > { %v1336_v9 = vcvt.f32.s32 %v1335_v6 }
 0x81e   : > { %v1339_v11 = vadd.s32 %v1338_v7, %v1336_v9 }
 0x820   : > { %v1340_v14 = vrot.slane %v1339_v11, 4 }
 0x822   : > { %vm1341_vm13 = vcmp.lt.s32.totalorder %v1339_v11, %v1340_v14 }
 0x823   : > { %v1342_v16 = vsel %vm1341_vm13, %v1339_v11, %v1340_v14 }
 0x824   : > { %v1343_v19 = vrot.slane %v1342_v16, 2 }
 0x826   : > { %vm1344_vm14 = vcmp.lt.s32.totalorder %v1342_v16, %v1343_v19 }
 0x827   : > { %v1345_v20 = vsel %vm1344_vm14, %v1342_v16, %v1343_v19 }
 0x828   : > { %v1346_v21 = vrot.slane %v1345_v20, 1 }
 0x82a   : > { %vm1347_vm15 = vcmp.lt.s32.totalorder %v1345_v20, %v1346_v21 }
 0x82b   : > { %v1348_v22 = vsel %vm1347_vm15, %v1345_v20, %v1346_v21 }
 0x82c   : > { %1655 = vpush %v1348_v22 }
 0x85d   : > { %s1656_s15 = spop %1655 }
 0x85e   : > { %p1559_p3 = scmp.eq.s32.totalorder %s1656_s15, 2 }
 0x85f   : > { %v1354_v23 = vstv (!%p1559_p3), %s2123_s8  ;;  %v1356_v24 = vld [vmem:[#allocation20] sm:$0x1] (!%p1559_p3)  ;;  %v1357_v25 = vstv (!%p1559_p3), %s1656_s15  ;;  %v1361_v26 = vld [vmem:[#allocation23] sm:$0x3f] (!%p1559_p3)  ;;  %v1365_v27 = vrot.slane (!%p1559_p3), %v2436_v55, %v2383_v41  ;;  %v1368_v29 = vsub.f32 (!%p1559_p3), %v1311_v49, %v1317_v56  ;;  %1401 = vst [vmem:[#allocation3] sm:$0x1] (!%p1559_p3), %v2428_v37 }
 0x860   : > { %1353 = sbr.rel (%p1559_p3) target bundleno = 2324 (0x914), region = 88  ;;  %vm1355_vm2 = vcmp.eq.s32.totalorder (!%p1559_p3), %v2345_v3, %v1354_v23  ;;  %vm1360_vm4 = vcmp.eq.s32.totalorder (!%p1559_p3), %v2347_v4, %v1354_v23  ;;  %v1369_v30 = vsub.f32 (!%p1559_p3), %v1312_v52, %v1317_v56  ;;  %s1402_s5 = sadd.s32 (!%p1559_p3), 1, %s2123_s8 }
 0x861   : > { %v1358_v31 = vsel (!%p1559_p3), %vm1355_vm2, %v1357_v25, %v1356_v24  ;;  %v1366_v32 = vsel (!%p1559_p3), %vm1360_vm4, %v1365_v27, %v1361_v26  ;;  %v1370_v33 = vmul.f32 (!%p1559_p3), 1.442695, %v1368_v29  ;;  %1403 = sst [smem:[#allocation4]] (!%p1559_p3), %s1402_s5 }
 0x862   : > { %1359 = vst.msk [vmem:[#allocation20] sm:$0x1] (!%p1559_p3), %vm186_vm0, %v1358_v31  ;;  %v1372_v34 = vmul.f32 (!%p1559_p3), 1.442695, %v1369_v30 }
 0x863   : > { %1367 = vst.msk [vmem:[#allocation23] sm:$0x3f] (!%p1559_p3), %vm188_vm1, %v1366_v32  ;;  %1833 = vpow2.f32 (!%p1559_p3), %v1370_v33 }
 0x864   : > { %1835 = vpow2.f32 (!%p1559_p3), %v1372_v34 }
 0x86d   : > { %v1834_v41 = vpop.eup %1833 }
 0x86e   : > { %v1836_v55 = vpop.eup %1835  ;;  %v1374_v37 = vsel %vm920_vm5, %v1834_v41, 0.0 }
 0x86f   : > { %v1375_v35 = vsel %vm920_vm5, %v1836_v55, 0.0 }
 0x870   : > { %v1376_v36 = vadd.f32 %v1375_v35, %v1374_v37 }
 0x872   : > { %1377 = vadd.xlane.f32.xlu0 %v1376_v36 }
 0x8ff   : > { %v1378_v38 = vpop.xlane.xlu0 %1377 }
 0x900   : > { %1837 = vrcp.f32 %v1378_v38 }
 0x90a   : > { %v1838_v39 = vpop.eup %1837 }
 0x90b   : > { %v1380_v40 = vmul.f32 %v1838_v39, %v1834_v41  ;;  %v1381_v42 = vmul.f32 %v1838_v39, %v1836_v55 }
 0x90d   : > { %v1384_v43 = vcombine.low %v1380_v40, %v1381_v42 }
 0x90f   : > { %v1391_v44 = vrot.slane %v1384_v43, %v2356_v10 }
 0x911   : > { %v1398_v45 = vrot.slane %v1391_v44, %v2356_v10 }
 0x913   : > { %1400 = vst.msk [vmem:[#allocation2] sm:$0x3] %vm2365_vm3, %v1398_v45 }
 0x914 PF: > { %s198_s8 = sadd.s32 1, %s2123_s8  }
 0x915   : > { %p195_p4 = scmp.ge.s32.totalorder %s198_s8, 6  }
 0x916   :  { %s1404_s25 = sld [smem:[#allocation4]] (%p195_p4)  ;;  %s2147_s29 = smov (%p195_p4), [#allocation21]   ;;  %vm1406_vm5 = vcmask (%p195_p4), 0  }
 0x917   :  { %197 = sbr.rel (!%p195_p4) target bundleno = 177 (0xb1), region = 124  ;;  %s1424_s30 = sshll.u32 (%p195_p4), %s2147_s29, 4  ;;  %s1425_s30 = int_to_ptr.vmem [resolvable:$true] %s1424_s30 }
 0x918   :  { %s2148_s12 = smov (%p195_p4), [#allocation20]  }
 0x919   :  { %s1414_s14 = sshll.u32 (%p195_p4), %s2148_s12, 4  ;;  %s1415_s14 = int_to_ptr.vmem [resolvable:$true] %s1414_s14 }
 0x91a   :  { %s2037_s0 = scalar_lea.vmem (%p195_p4), %s1415_s14, 16  ;;  %s2041_s13 = scalar_lea.vmem (%p195_p4), %s1415_s14, 32 }
 0x91b   :  { %p2038_p5 = scmp.ne.s32.totalorder (%p195_p4), %s1415_s14, %s2037_s0  ;;  %p2042_p6 = scmp.lt.s32.totalorder (%p195_p4), %s1415_s14, %s1415_s14 }
 0x91c   :  { %p2043_p7 = scmp.lt.s32.totalorder (%p195_p4), %s2041_s13, %s2037_s0 }
 0x91e   :  { %p2044_p8 = por %p2043_p7, %p2042_p6 }
 0x920   :  { %p2045_p9 = pnand %p2044_p8, %p2038_p5 }
 0x922   :  { %2048 = shalt.err (!%p2045_p9)
}
 0x923   :  { %s2049_s4 = scalar_lea.hbm %s2514_s9, 16 }
 0x924   :  { %p2050_p10 = scmp.ne.s32.totalorder %s2514_s9, %s2049_s4  ;;  %p2053_p11 = scmp.lt.u32.totalorder %s2049_s4, %s2514_s9 }
 0x926   :  { %p2055_p12 = pnand %p2053_p11, %p2050_p10 }
 0x928   :  { %2058 = shalt.err (!%p2055_p12)
}
 0x929   :  { %1417 = dma.vmem_to_hbm [thread:$0]  %s1415_s14, 16, %s2514_s9, [#allocation7]   ;;  %v1405_v3 = vstv %s1404_s25 }
 0x92a   :  { %s2149_s7 = smov [#allocation23]   ;;  %1407 = vst.msk [vmem:[#allocation21] sm:$0x1] %vm1406_vm5, %v1405_v3  ;;  %s2059_s23 = scalar_lea.vmem %s1425_s30, 16 }
 0x92b   :  { %s1434_s27 = sshll.u32 %s2149_s7, 4  ;;  %p2060_p13 = scmp.ne.s32.totalorder %s1425_s30, %s2059_s23  ;;  %s1435_s27 = int_to_ptr.vmem [resolvable:$true] %s1434_s27 }
 0x92c   :  { %s2063_s24 = scalar_lea.vmem %s1425_s30, 32  ;;  %p2064_p0 = scmp.lt.s32.totalorder %s1425_s30, %s1425_s30 }
 0x92d   :  { %p2065_p1 = scmp.lt.s32.totalorder %s2063_s24, %s2059_s23 }
 0x92f   :  { %p2066_p2 = por %p2065_p1, %p2064_p0 }
 0x931   :  { %p2067_p3 = pnand %p2066_p2, %p2060_p13 }
 0x933   :  { %2070 = shalt.err (!%p2067_p3)
}
 0x934   :  { %s2071_s21 = scalar_lea.hbm %s2515_s10, 16 }
 0x935   :  { %p2072_p4 = scmp.ne.s32.totalorder %s2515_s10, %s2071_s21  ;;  %p2075_p5 = scmp.lt.u32.totalorder %s2071_s21, %s2515_s10 }
 0x937   :  { %p2077_p6 = pnand %p2075_p5, %p2072_p4 }
 0x939   :  { %2080 = shalt.err (!%p2077_p6)
}
 0x93a   :  { %1427 = dma.vmem_to_hbm [thread:$0]  %s1425_s30, 16, %s2515_s10, [#allocation22]  }
 0x93b   :  { %s2081_s25 = scalar_lea.vmem %s1435_s27, 128  ;;  %p2086_p8 = scmp.lt.s32.totalorder %s1435_s27, %s1435_s27 }
 0x93c   :  { %p2082_p7 = scmp.ne.s32.totalorder %s1435_s27, %s2081_s25  ;;  %p2087_p9 = scmp.lt.s32.totalorder %s2081_s25, %s2081_s25 }
 0x93e   :  { %p2088_p10 = por %p2087_p9, %p2086_p8 }
 0x940   :  { %p2089_p11 = pnand %p2088_p10, %p2082_p7 }
 0x942   :  { %2092 = shalt.err (!%p2089_p11)
}
 0x943   :  { %s2093_s14 = scalar_lea.hbm %s2516_s11, 128 }
 0x944   :  { %p2094_p12 = scmp.ne.s32.totalorder %s2516_s11, %s2093_s14  ;;  %p2097_p13 = scmp.lt.u32.totalorder %s2093_s14, %s2516_s11 }
 0x946   :  { %p2099_p0 = pnand %p2097_p13, %p2094_p12 }
 0x948   :  { %2102 = shalt.err (!%p2099_p0)
}
 0x949   :  { %1437 = dma.vmem_to_hbm [thread:$0]  %s1435_s27, 128, %s2516_s11, [#allocation22]  }
 0x94a   :  { %2117 = dma.done.wait [#allocation7], 16  }
 0x94b   :  { %2118 = vsyncadd [#allocation7], 4294967280 }
 0x94c   :  { %2119 = dma.done.wait [#allocation22], 144  }
 0x94d   :  { %2120 = vsyncadd [#allocation22], 4294967152 }
 0x94e   :  { %1447 = vsyncpa [#allocation6], 1 }
 0x94f   :  { %1448 = vsyncpa [#allocation9], 1 }
 0x950   :  { %1449 = vsyncpa [#allocation12], 1 }
 0x951   :  { %1450 = vsyncpa [#allocation15], 1 }
 0x952   :  { %1451 = vsyncpa [#allocation18], 1 }
 0x953   :  { %1452 = vsyncpa [#allocation7], 1 }
 0x954   :  { %1453 = vsyncpa [#allocation22], 1 }

</bundles_post_ra>
